<compile_context>
chip_gen: v7x
topology: tpu7x:2x2x1
jax: 0.10.0
libtpu: 0.0.40
codegen_flags: <defaults>
</compile_context>

<pallas_src>
import jax
import jax.numpy as jnp
from jax.experimental import pallas as pl
from jax.experimental.pallas import tpu as pltpu

# ---------------- problem sizes (small, consistent with the module) -------------
BS = 2                 # batch
C_IN = 3               # image channels
IMG_H = IMG_W = 16     # image spatial size
SPATIAL = 4            # spatial_size  -> L = 16 attended locations
L = SPATIAL * SPATIAL
FEAT = 8               # feature_dim  (stand-in for resnet out_size)
EMB = 8                # emb_dim
MEM = 16               # memory_dim == attn_dim
VOCAB = 32             # vocab_size
MAX_SEQLEN = 8
T_STEPS = MAX_SEQLEN - 1
BOS_IDX = 1            # unused in forward (teacher forcing)

# ----- packed-layout column offsets (all fused segments start on 128-lane bounds) -----
ENC_COLS = L * MEM                    # 256  (enc_attn(feature), lane-packed over L)
FP_COLS = ENC_COLS + 2 * MEM          # 288  ([enc | init_h | init_c])
DEC_OFF = 0                           # dec_attn(hn) tiled over L    [0, 256)
GATE_OFF = 256                        # hn @ W_hh (+ b_lstm)         [256, 320)
OUT_OFF = 384                         # hn @ W_out (+ b_out)         [384, 416)
BETA_OFF = OUT_OFF + VOCAB            # hn @ w_beta (+ b_beta)       [416, 417)
HN_COLS = 512                         # lane-padded fused hn-projection width
NLOGIT = T_STEPS * VOCAB              # 224
NALPHA = T_STEPS * L                  # 112
OUT_SLAB = 512                        # lane-dense output slab width
CAPG_STRIDE = 128                     # per-step capg slot (64 gate cols + 64 pad)


# =============================== fused kernel ====================================

def captioning_kernel(pooled_ref, capg_ref, w_conv_ref, w_feat_ref, w_attn_ref,
                      w_fl_ref, w_hn_ref, bias_ref, out_ref):
    # ---- hoisted parameter loads (one load each, reused by all 7 steps) ----
    bias = bias_ref[...]
    b_feat = bias[0:1, 0:L * FEAT]          # tile(bc, L)                      (1, 128)
    b_fp = bias[1:2, 0:FP_COLS]             # [tile(b_enc+b_dec, L) | b_init]  (1, 288)
    b_hn = bias[2:3, 0:HN_COLS]             # [0 | b_lstm | 0 | b_out | b_beta](1, 512)

    w_attn_big = w_attn_ref[...]            # (L*MEM, L)
    w_fl = w_fl_ref[...]                    # (L*FEAT, 4*MEM)  == ffold @ w_lf
    w_hn = w_hn_ref[...]                    # (MEM, 512)
    capg_all = capg_ref[...]                # (BS, T*128)  xn @ W_ih per step (padded)

    # alpha-expansion mask kron(I_L, ones(1, FEAT)) built in-register (no DMA operand)
    row = jax.lax.broadcasted_iota(jnp.int32, (L, L * FEAT), 0)
    col = jax.lax.broadcasted_iota(jnp.int32, (L, L * FEAT), 1)
    lo = row * FEAT
    aexp = jnp.logical_and(col >= lo, col < lo + FEAT).astype(jnp.float32)   # (L, L*FEAT)

    # ---- fused image encoder: 1x1-conv applied to the wrapper-pooled image ----
    feat_flat = jnp.dot(pooled_ref[...], w_conv_ref[...],
                        preferred_element_type=jnp.float32) + b_feat        # (BS, L*FEAT)

    # ---- loop-invariant projections: enc_attn(feature), init_h, init_c ----
    fp = jnp.dot(feat_flat, w_feat_ref[...],
                 preferred_element_type=jnp.float32) + b_fp                 # (BS, 288)
    enc_flat = fp[:, 0:ENC_COLS]            # enc_attn(feature)+b_enc+b_dec  (BS, L*MEM)
    hn = fp[:, ENC_COLS:ENC_COLS + MEM]     # init_h(feature)                (BS, MEM)
    cn = fp[:, ENC_COLS + MEM:FP_COLS]      # init_c(feature)                (BS, MEM)

    # fused projection of hn: [dec_attn tiled over L | W_hh | pad | out linear | f_beta]
    hn_proj = jnp.dot(hn, w_hn, preferred_element_type=jnp.float32) + b_hn  # (BS, 512)

    outs = []
    alphas = []
    for step in range(T_STEPS):             # static unroll; hn/cn stay in vregs
        dec_big = hn_proj[:, DEC_OFF:DEC_OFF + ENC_COLS]                    # (BS, L*MEM)
        gate_h = hn_proj[:, GATE_OFF:GATE_OFF + 4 * MEM]                    # (BS, 4*MEM)
        beta = jax.nn.sigmoid(hn_proj[:, BETA_OFF:BETA_OFF + 1])            # (BS, 1)

        # ---- attention scores + softmax over L locations (b_attn cancels) ----
        act = jnp.maximum(enc_flat + dec_big, 0.0)                          # (BS, L*MEM)
        scores = jnp.dot(act, w_attn_big, preferred_element_type=jnp.float32)  # (BS, L)
        scores = scores - jnp.max(scores, axis=-1, keepdims=True)
        e = jnp.exp(scores)
        alpha = e / jnp.sum(e, axis=-1, keepdims=True)                      # exact divide

        # ---- LSTM gate contribution of the attention-weighted feature (fused) ----
        alpha_big = jnp.dot(alpha, aexp, preferred_element_type=jnp.float32)   # (BS, L*F)
        gate_f = jnp.dot(feat_flat * alpha_big, w_fl,
                         preferred_element_type=jnp.float32) * beta            # (BS, 4M)

        # ---- LSTM cell: xn@W_ih folded into capg (wrapper), hn@W_hh in hn_proj ----
        x_gate = capg_all[:, step * CAPG_STRIDE:step * CAPG_STRIDE + 4 * MEM]
        gates = x_gate + gate_h + gate_f                                    # (BS, 4*MEM)
        i_g = jax.nn.sigmoid(gates[:, 0 * MEM:1 * MEM])
        f_g = jax.nn.sigmoid(gates[:, 1 * MEM:2 * MEM])
        g_g = jnp.tanh(gates[:, 2 * MEM:3 * MEM])
        o_g = jax.nn.sigmoid(gates[:, 3 * MEM:4 * MEM])
        cn = f_g * cn + i_g * g_g
        hn = o_g * jnp.tanh(cn)

        # one fused matmul gives this step's logits AND next step's dec/beta/gate_h
        hn_proj = jnp.dot(hn, w_hn, preferred_element_type=jnp.float32) + b_hn
        outs.append(hn_proj[:, OUT_OFF:OUT_OFF + VOCAB])                    # (BS, VOCAB)
        alphas.append(alpha)                                                # (BS, L)

    # single lane-dense store: [logits 0..6 | alphas 0..6 | zero pad] -> (BS, 512)
    pad = jnp.zeros((BS, OUT_SLAB - NLOGIT - NALPHA), jnp.float32)
    out_ref[...] = jnp.concatenate(outs + alphas + [pad], axis=-1)


# =============================== wrapper =========================================

@jax.jit
def forward(image, caption, length, packed):
    del length  # unused by the PyTorch forward as well (shape metadata only)

    # adaptive avg-pool done in the wrapper (H, W divide evenly by SPATIAL); pooling
    # commutes with the 1x1-conv stand-in encoder, so the kernel applies kron(I_L, wc).
    pooled = image.reshape(BS, C_IN, SPATIAL, IMG_H // SPATIAL, SPATIAL, IMG_W // SPATIAL)
    pooled = pooled.mean(axis=(3, 5))                                   # (BS, C, S, S)
    pooled = jnp.transpose(pooled, (0, 2, 3, 1)).reshape(BS, L * C_IN)  # (BS, 48)

    # token-embedding gather, already folded with W_ih; pad each step to a 128-lane slot
    capg = packed["emb_lx"][caption[:, :T_STEPS]]                       # (BS, T, 4*MEM)
    capg = jnp.pad(capg, ((0, 0), (0, 0), (0, CAPG_STRIDE - 4 * MEM)))
    capg = capg.reshape(BS, T_STEPS * CAPG_STRIDE)                      # (BS, 896)

    operands = (pooled, capg, packed["w_conv"], packed["w_feat"],
                packed["w_attn_big"], packed["w_fl"], packed["w_hn"], packed["bias"])

    slab = pl.pallas_call(
        captioning_kernel,
        out_shape=jax.ShapeDtypeStruct((BS, OUT_SLAB), jnp.float32),
        in_specs=[pl.BlockSpec(memory_space=pltpu.MemorySpace.VMEM)
                  for _ in operands],
        out_specs=pl.BlockSpec(memory_space=pltpu.MemorySpace.VMEM),
    )(*operands)

    out = slab[:, :NLOGIT].reshape(BS, T_STEPS, VOCAB)
    out = jnp.transpose(out, (0, 2, 1))                                 # (bs, vocab, T-1)
    alphas = slab[:, NLOGIT:NLOGIT + NALPHA].reshape(BS, T_STEPS, L)
    alphas = jnp.transpose(alphas, (0, 2, 1))                           # (bs, L, T-1)
    return out, alphas


# =============================== params / packing ================================

def build_pool_matrix():
    hb, wb = IMG_H // SPATIAL, IMG_W // SPATIAL
    hs = jnp.arange(IMG_H) // hb
    ws = jnp.arange(IMG_W) // wb
    loc = (hs[:, None] * SPATIAL + ws[None, :]).reshape(-1)           # (H*W,)
    pool = (jnp.arange(L)[:, None] == loc[None, :]).astype(jnp.float32)
    return pool / float(hb * wb)                                       # (L, H*W)


def init_params(key):
    keys = jax.random.split(key, 24)

    def dense(k, shape, scale=0.1):
        return scale * jax.random.normal(k, shape, jnp.float32)

    return dict(
        wc=dense(keys[0], (C_IN, FEAT)), bc=dense(keys[1], (1, FEAT)),
        pool=build_pool_matrix(),
        w_init_h=dense(keys[2], (L * FEAT, MEM)), b_init_h=dense(keys[3], (1, MEM)),
        w_init_c=dense(keys[4], (L * FEAT, MEM)), b_init_c=dense(keys[5], (1, MEM)),
        w_enc=dense(keys[6], (FEAT, MEM)), b_enc=dense(keys[7], (1, MEM)),
        w_dec=dense(keys[8], (MEM, MEM)), b_dec=dense(keys[9], (1, MEM)),
        w_attn=dense(keys[10], (1, MEM)), b_attn=dense(keys[11], (1, 1)),
        w_beta=dense(keys[12], (MEM, 1)), b_beta=dense(keys[13], (1, 1)),
        emb=dense(keys[14], (VOCAB, EMB)),
        w_lx=dense(keys[15], (EMB, 4 * MEM)), w_lf=dense(keys[16], (FEAT, 4 * MEM)),
        w_lh=dense(keys[17], (MEM, 4 * MEM)), b_lstm=dense(keys[18], (1, 4 * MEM)),
        w_out=dense(keys[19], (MEM, VOCAB)), b_out=dense(keys[20], (1, VOCAB)),
    )


def pack_params(params):
    """One-time restructuring of the module weights into MXU-friendly packed arrays."""
    eye_l = jnp.eye(L, dtype=jnp.float32)

    # encoder (post-pool): feat_flat = pooled @ kron(I_L, wc) + tile(bc, L)
    w_conv = jnp.kron(eye_l, params["wc"])                                 # (L*C, L*F)

    # loop-invariant: [kron(I_L, w_enc) | w_init_h | w_init_c]
    w_enc_big = jnp.kron(eye_l, params["w_enc"])                           # (L*F, L*MEM)
    w_feat = jnp.concatenate(
        [w_enc_big, params["w_init_h"], params["w_init_c"]], axis=1)       # (L*F, 288)

    w_attn_big = jnp.kron(eye_l, params["w_attn"].T)                       # (L*MEM, L)

    # fold the (L*F, F) location-sum matrix into the LSTM feature weight at pack time
    w_fl = jnp.tile(params["w_lf"], (L, 1))                                # (L*F, 4*MEM)

    # fused hn projection, 128-lane-aligned segments:
    #   [tile(w_dec, L) | w_lh | pad | w_out | w_beta | pad] -> (MEM, 512)
    w_hn = jnp.zeros((MEM, HN_COLS), jnp.float32)
    w_hn = w_hn.at[:, DEC_OFF:DEC_OFF + ENC_COLS].set(jnp.tile(params["w_dec"], (1, L)))
    w_hn = w_hn.at[:, GATE_OFF:GATE_OFF + 4 * MEM].set(params["w_lh"])
    w_hn = w_hn.at[:, OUT_OFF:OUT_OFF + VOCAB].set(params["w_out"])
    w_hn = w_hn.at[:, BETA_OFF:BETA_OFF + 1].set(params["w_beta"])

    # fold the LSTM input weight into the embedding table: gather gives xn @ W_ih
    emb_lx = params["emb"] @ params["w_lx"]                                # (VOCAB, 4*MEM)

    b_fp = jnp.concatenate(
        [jnp.tile(params["b_enc"] + params["b_dec"], (1, L)),
         params["b_init_h"], params["b_init_c"]], axis=1)                  # (1, 288)
    b_hn = jnp.zeros((1, HN_COLS), jnp.float32)
    b_hn = b_hn.at[:, GATE_OFF:GATE_OFF + 4 * MEM].set(params["b_lstm"])
    b_hn = b_hn.at[:, OUT_OFF:OUT_OFF + VOCAB].set(params["b_out"])
    b_hn = b_hn.at[:, BETA_OFF:BETA_OFF + 1].set(params["b_beta"])

    bias = jnp.zeros((8, HN_COLS), jnp.float32)
    bias = bias.at[0, :L * FEAT].set(jnp.tile(params["bc"], (1, L))[0])
    bias = bias.at[1, :FP_COLS].set(b_fp[0])
    bias = bias.at[2, :HN_COLS].set(b_hn[0])
    # b_attn deliberately dropped: a constant added to all scores cancels in softmax.

    return dict(w_conv=w_conv, w_feat=w_feat, w_attn_big=w_attn_big,
                w_fl=w_fl, w_hn=w_hn, emb_lx=emb_lx, bias=bias)


# =============================== pure-JAX reference ==============================

def reference_forward(image, caption, params):
    """Pure-JAX reference mirroring the PyTorch forward (teacher forcing, eval)."""
    img = jnp.transpose(image, (0, 2, 3, 1)).reshape(BS, IMG_H * IMG_W, C_IN)
    y = img @ params["wc"] + params["bc"]
    feat = jnp.einsum("sp,bpf->bsf", params["pool"], y)
    ff = feat.reshape(BS, L * FEAT)
    hn = ff @ params["w_init_h"] + params["b_init_h"]
    cn = ff @ params["w_init_c"] + params["b_init_c"]
    cap_emb = params["emb"][caption]
    outs, alphas = [], []
    for step in range(T_STEPS):
        enc = jnp.einsum("blf,fa->bla", feat, params["w_enc"]) + params["b_enc"]
        dec = hn @ params["w_dec"] + params["b_dec"]
        act = jnp.maximum(enc + dec[:, None, :], 0.0)
        scores = jnp.sum(act * params["w_attn"][None], axis=-1) + params["b_attn"]
        alpha = jax.nn.softmax(scores, axis=1)
        weighted = jnp.sum(feat * alpha[:, :, None], axis=1)
        beta = jax.nn.sigmoid(hn @ params["w_beta"] + params["b_beta"])
        weighted = weighted * beta
        xn = cap_emb[:, step, :]
        gates = (xn @ params["w_lx"] + weighted @ params["w_lf"]
                 + hn @ params["w_lh"] + params["b_lstm"])
        i_g = jax.nn.sigmoid(gates[:, :MEM]); f_g = jax.nn.sigmoid(gates[:, MEM:2 * MEM])
        g_g = jnp.tanh(gates[:, 2 * MEM:3 * MEM]); o_g = jax.nn.sigmoid(gates[:, 3 * MEM:])
        cn = f_g * cn + i_g * g_g
        hn = o_g * jnp.tanh(cn)
        outs.append(hn @ params["w_out"] + params["b_out"])
        alphas.append(alpha)
    return jnp.stack(outs, axis=-1), jnp.stack(alphas, axis=-1)


# ==================================== main =======================================

if __name__ == "__main__":
    key = jax.random.PRNGKey(0)
    k_img, k_cap, k_par = jax.random.split(key, 3)
    image = jax.random.normal(k_img, (BS, C_IN, IMG_H, IMG_W), jnp.float32)
    caption = jax.random.randint(k_cap, (BS, MAX_SEQLEN), 0, VOCAB)
    length = jnp.full((BS,), MAX_SEQLEN, dtype=jnp.int32)
    params = init_params(k_par)
    packed = pack_params(params)

    out, alphas = forward(image, caption, length, packed)
    out = jax.block_until_ready(out)
    alphas = jax.block_until_ready(alphas)

    assert out.shape == (BS, VOCAB, MAX_SEQLEN - 1), out.shape
    assert alphas.shape == (BS, L, MAX_SEQLEN - 1), alphas.shape

    ref_out, ref_alphas = reference_forward(image, caption, params)
    assert jnp.allclose(out, ref_out, atol=1e-4, rtol=1e-2), "logits mismatch"
    assert jnp.allclose(alphas, ref_alphas, atol=1e-4, rtol=1e-2), "alphas mismatch"

    print("KERNEL_OK")
</pallas_src>

<mosaic_0001>
module attributes {stable_mosaic.version = 11 : i64} {
  func.func @captioning_kernel(%arg0: memref<2x48xf32, #tpu.memory_space<vmem>>, %arg1: memref<2x896xf32, #tpu.memory_space<vmem>>, %arg2: memref<48x128xf32, #tpu.memory_space<vmem>>, %arg3: memref<128x288xf32, #tpu.memory_space<vmem>>, %arg4: memref<256x16xf32, #tpu.memory_space<vmem>>, %arg5: memref<128x64xf32, #tpu.memory_space<vmem>>, %arg6: memref<16x512xf32, #tpu.memory_space<vmem>>, %arg7: memref<8x512xf32, #tpu.memory_space<vmem>>, %arg8: memref<2x512xf32, #tpu.memory_space<vmem>>) attributes {dimension_semantics = [], scalar_prefetch = 0 : i64, scratch_operands = 0 : i64, tpu.core_type = #tpu.core_type<tc>} {
    %c0 = arith.constant 0 : index
    %c0_0 = arith.constant 0 : index
    %0 = vector.load %arg7[%c0, %c0_0] : memref<8x512xf32, #tpu.memory_space<vmem>>, vector<8x512xf32>
    %1 = vector.extract_strided_slice %0 {offsets = [0, 0], sizes = [1, 128], strides = [1, 1]} : vector<8x512xf32> to vector<1x128xf32>
    %2 = vector.extract_strided_slice %0 {offsets = [1, 0], sizes = [1, 288], strides = [1, 1]} : vector<8x512xf32> to vector<1x288xf32>
    %3 = vector.extract_strided_slice %0 {offsets = [2, 0], sizes = [1, 512], strides = [1, 1]} : vector<8x512xf32> to vector<1x512xf32>
    %c0_1 = arith.constant 0 : index
    %c0_2 = arith.constant 0 : index
    %4 = vector.load %arg4[%c0_1, %c0_2] : memref<256x16xf32, #tpu.memory_space<vmem>>, vector<256x16xf32>
    %c0_3 = arith.constant 0 : index
    %c0_4 = arith.constant 0 : index
    %5 = vector.load %arg5[%c0_3, %c0_4] : memref<128x64xf32, #tpu.memory_space<vmem>>, vector<128x64xf32>
    %c0_5 = arith.constant 0 : index
    %c0_6 = arith.constant 0 : index
    %6 = vector.load %arg6[%c0_5, %c0_6] : memref<16x512xf32, #tpu.memory_space<vmem>>, vector<16x512xf32>
    %c0_7 = arith.constant 0 : index
    %c0_8 = arith.constant 0 : index
    %7 = vector.load %arg1[%c0_7, %c0_8] : memref<2x896xf32, #tpu.memory_space<vmem>>, vector<2x896xf32>
    %8 = tpu.iota {dimensions = array<i32: 0>} : vector<16x128xi32>
    %9 = tpu.iota {dimensions = array<i32: 1>} : vector<16x128xi32>
    %c8_i32 = arith.constant 8 : i32
    %10 = vector.broadcast %c8_i32 : i32 to vector<16x128xi32>
    %11 = arith.muli %8, %10 : vector<16x128xi32>
    %12 = arith.cmpi sge, %9, %11 : vector<16x128xi32>
    %c8_i32_9 = arith.constant 8 : i32
    %13 = vector.broadcast %c8_i32_9 : i32 to vector<16x128xi32>
    %14 = arith.addi %11, %13 : vector<16x128xi32>
    %15 = arith.cmpi slt, %9, %14 : vector<16x128xi32>
    %16 = arith.andi %12, %15 : vector<16x128xi1>
    %17 = arith.extui %16 : vector<16x128xi1> to vector<16x128xi32>
    %18 = arith.sitofp %17 : vector<16x128xi32> to vector<16x128xf32>
    %c0_10 = arith.constant 0 : index
    %c0_11 = arith.constant 0 : index
    %19 = vector.load %arg0[%c0_10, %c0_11] : memref<2x48xf32, #tpu.memory_space<vmem>>, vector<2x48xf32>
    %c0_12 = arith.constant 0 : index
    %c0_13 = arith.constant 0 : index
    %20 = vector.load %arg2[%c0_12, %c0_13] : memref<48x128xf32, #tpu.memory_space<vmem>>, vector<48x128xf32>
    %cst = arith.constant dense<0.000000e+00> : vector<2x128xf32>
    %21 = tpu.matmul %19, %20, %cst {dimension_numbers = #tpu.dot_dimension_numbers<[1], [0], [0], [1], [0, 0, 1, 1], [], []>} : vector<2x48xf32>, vector<48x128xf32>, vector<2x128xf32> -> vector<2x128xf32>
    %22 = vector.broadcast %1 : vector<1x128xf32> to vector<2x128xf32>
    %23 = arith.addf %21, %22 : vector<2x128xf32>
    %c0_14 = arith.constant 0 : index
    %c0_15 = arith.constant 0 : index
    %24 = vector.load %arg3[%c0_14, %c0_15] : memref<128x288xf32, #tpu.memory_space<vmem>>, vector<128x288xf32>
    %cst_16 = arith.constant dense<0.000000e+00> : vector<2x288xf32>
    %25 = tpu.matmul %23, %24, %cst_16 {dimension_numbers = #tpu.dot_dimension_numbers<[1], [0], [0], [1], [0, 0, 1, 1], [], []>} : vector<2x128xf32>, vector<128x288xf32>, vector<2x288xf32> -> vector<2x288xf32>
    %26 = vector.broadcast %2 : vector<1x288xf32> to vector<2x288xf32>
    %27 = arith.addf %25, %26 : vector<2x288xf32>
    %28 = vector.extract_strided_slice %27 {offsets = [0, 0], sizes = [2, 256], strides = [1, 1]} : vector<2x288xf32> to vector<2x256xf32>
    %29 = vector.extract_strided_slice %27 {offsets = [0, 256], sizes = [2, 16], strides = [1, 1]} : vector<2x288xf32> to vector<2x16xf32>
    %30 = vector.extract_strided_slice %27 {offsets = [0, 272], sizes = [2, 16], strides = [1, 1]} : vector<2x288xf32> to vector<2x16xf32>
    %cst_17 = arith.constant dense<0.000000e+00> : vector<2x512xf32>
    %31 = tpu.matmul %29, %6, %cst_17 {dimension_numbers = #tpu.dot_dimension_numbers<[1], [0], [0], [1], [0, 0, 1, 1], [], []>} : vector<2x16xf32>, vector<16x512xf32>, vector<2x512xf32> -> vector<2x512xf32>
    %32 = vector.broadcast %3 : vector<1x512xf32> to vector<2x512xf32>
    %33 = arith.addf %31, %32 : vector<2x512xf32>
    %34 = vector.extract_strided_slice %33 {offsets = [0, 0], sizes = [2, 256], strides = [1, 1]} : vector<2x512xf32> to vector<2x256xf32>
    %35 = vector.extract_strided_slice %33 {offsets = [0, 256], sizes = [2, 64], strides = [1, 1]} : vector<2x512xf32> to vector<2x64xf32>
    %36 = vector.extract_strided_slice %33 {offsets = [0, 416], sizes = [2, 1], strides = [1, 1]} : vector<2x512xf32> to vector<2x1xf32>
    %37 = arith.negf %36 : vector<2x1xf32>
    %38 = math.exp %37 : vector<2x1xf32>
    %cst_18 = arith.constant 1.000000e+00 : f32
    %39 = vector.broadcast %cst_18 : f32 to vector<2x1xf32>
    %40 = arith.addf %39, %38 : vector<2x1xf32>
    %41 = arith.divf %39, %40 : vector<2x1xf32>
    %42 = arith.addf %28, %34 : vector<2x256xf32>
    %cst_19 = arith.constant 0.000000e+00 : f32
    %43 = vector.broadcast %cst_19 : f32 to vector<2x256xf32>
    %44 = arith.maximumf %42, %43 : vector<2x256xf32>
    %cst_20 = arith.constant dense<0.000000e+00> : vector<2x16xf32>
    %45 = tpu.matmul %44, %4, %cst_20 {dimension_numbers = #tpu.dot_dimension_numbers<[1], [0], [0], [1], [0, 0, 1, 1], [], []>} : vector<2x256xf32>, vector<256x16xf32>, vector<2x16xf32> -> vector<2x16xf32>
    %cst_21 = arith.constant dense<0xFF800000> : vector<2xf32>
    %46 = vector.multi_reduction <maximumf>, %45, %cst_21 [1] : vector<2x16xf32> to vector<2xf32>
    %47 = vector.shape_cast %46 : vector<2xf32> to vector<2x1xf32>
    %48 = vector.broadcast %47 : vector<2x1xf32> to vector<2x16xf32>
    %49 = arith.subf %45, %48 : vector<2x16xf32>
    %50 = math.exp %49 : vector<2x16xf32>
    %cst_22 = arith.constant dense<0.000000e+00> : vector<2xf32>
    %51 = vector.multi_reduction <add>, %50, %cst_22 [1] : vector<2x16xf32> to vector<2xf32>
    %52 = vector.shape_cast %51 : vector<2xf32> to vector<2x1xf32>
    %53 = vector.broadcast %52 : vector<2x1xf32> to vector<2x16xf32>
    %54 = arith.divf %50, %53 : vector<2x16xf32>
    %cst_23 = arith.constant dense<0.000000e+00> : vector<2x128xf32>
    %55 = tpu.matmul %54, %18, %cst_23 {dimension_numbers = #tpu.dot_dimension_numbers<[1], [0], [0], [1], [0, 0, 1, 1], [], []>} : vector<2x16xf32>, vector<16x128xf32>, vector<2x128xf32> -> vector<2x128xf32>
    %56 = arith.mulf %23, %55 : vector<2x128xf32>
    %cst_24 = arith.constant dense<0.000000e+00> : vector<2x64xf32>
    %57 = tpu.matmul %56, %5, %cst_24 {dimension_numbers = #tpu.dot_dimension_numbers<[1], [0], [0], [1], [0, 0, 1, 1], [], []>} : vector<2x128xf32>, vector<128x64xf32>, vector<2x64xf32> -> vector<2x64xf32>
    %58 = vector.broadcast %41 : vector<2x1xf32> to vector<2x64xf32>
    %59 = arith.mulf %57, %58 : vector<2x64xf32>
    %60 = vector.extract_strided_slice %7 {offsets = [0, 0], sizes = [2, 64], strides = [1, 1]} : vector<2x896xf32> to vector<2x64xf32>
    %61 = arith.addf %60, %35 : vector<2x64xf32>
    %62 = arith.addf %61, %59 : vector<2x64xf32>
    %63 = vector.extract_strided_slice %62 {offsets = [0, 0], sizes = [2, 16], strides = [1, 1]} : vector<2x64xf32> to vector<2x16xf32>
    %64 = arith.negf %63 : vector<2x16xf32>
    %65 = math.exp %64 : vector<2x16xf32>
    %cst_25 = arith.constant 1.000000e+00 : f32
    %66 = vector.broadcast %cst_25 : f32 to vector<2x16xf32>
    %67 = arith.addf %66, %65 : vector<2x16xf32>
    %68 = arith.divf %66, %67 : vector<2x16xf32>
    %69 = vector.extract_strided_slice %62 {offsets = [0, 16], sizes = [2, 16], strides = [1, 1]} : vector<2x64xf32> to vector<2x16xf32>
    %70 = arith.negf %69 : vector<2x16xf32>
    %71 = math.exp %70 : vector<2x16xf32>
    %cst_26 = arith.constant 1.000000e+00 : f32
    %72 = vector.broadcast %cst_26 : f32 to vector<2x16xf32>
    %73 = arith.addf %72, %71 : vector<2x16xf32>
    %74 = arith.divf %72, %73 : vector<2x16xf32>
    %75 = vector.extract_strided_slice %62 {offsets = [0, 32], sizes = [2, 16], strides = [1, 1]} : vector<2x64xf32> to vector<2x16xf32>
    %76 = math.tanh %75 : vector<2x16xf32>
    %77 = vector.extract_strided_slice %62 {offsets = [0, 48], sizes = [2, 16], strides = [1, 1]} : vector<2x64xf32> to vector<2x16xf32>
    %78 = arith.negf %77 : vector<2x16xf32>
    %79 = math.exp %78 : vector<2x16xf32>
    %cst_27 = arith.constant 1.000000e+00 : f32
    %80 = vector.broadcast %cst_27 : f32 to vector<2x16xf32>
    %81 = arith.addf %80, %79 : vector<2x16xf32>
    %82 = arith.divf %80, %81 : vector<2x16xf32>
    %83 = arith.mulf %74, %30 : vector<2x16xf32>
    %84 = arith.mulf %68, %76 : vector<2x16xf32>
    %85 = arith.addf %83, %84 : vector<2x16xf32>
    %86 = math.tanh %85 : vector<2x16xf32>
    %87 = arith.mulf %82, %86 : vector<2x16xf32>
    %cst_28 = arith.constant dense<0.000000e+00> : vector<2x512xf32>
    %88 = tpu.matmul %87, %6, %cst_28 {dimension_numbers = #tpu.dot_dimension_numbers<[1], [0], [0], [1], [0, 0, 1, 1], [], []>} : vector<2x16xf32>, vector<16x512xf32>, vector<2x512xf32> -> vector<2x512xf32>
    %89 = vector.broadcast %3 : vector<1x512xf32> to vector<2x512xf32>
    %90 = arith.addf %88, %89 : vector<2x512xf32>
    %91 = vector.extract_strided_slice %90 {offsets = [0, 384], sizes = [2, 32], strides = [1, 1]} : vector<2x512xf32> to vector<2x32xf32>
    %92 = vector.extract_strided_slice %90 {offsets = [0, 0], sizes = [2, 256], strides = [1, 1]} : vector<2x512xf32> to vector<2x256xf32>
    %93 = vector.extract_strided_slice %90 {offsets = [0, 256], sizes = [2, 64], strides = [1, 1]} : vector<2x512xf32> to vector<2x64xf32>
    %94 = vector.extract_strided_slice %90 {offsets = [0, 416], sizes = [2, 1], strides = [1, 1]} : vector<2x512xf32> to vector<2x1xf32>
    %95 = arith.negf %94 : vector<2x1xf32>
    %96 = math.exp %95 : vector<2x1xf32>
    %cst_29 = arith.constant 1.000000e+00 : f32
    %97 = vector.broadcast %cst_29 : f32 to vector<2x1xf32>
    %98 = arith.addf %97, %96 : vector<2x1xf32>
    %99 = arith.divf %97, %98 : vector<2x1xf32>
    %100 = arith.addf %28, %92 : vector<2x256xf32>
    %cst_30 = arith.constant 0.000000e+00 : f32
    %101 = vector.broadcast %cst_30 : f32 to vector<2x256xf32>
    %102 = arith.maximumf %100, %101 : vector<2x256xf32>
    %cst_31 = arith.constant dense<0.000000e+00> : vector<2x16xf32>
    %103 = tpu.matmul %102, %4, %cst_31 {dimension_numbers = #tpu.dot_dimension_numbers<[1], [0], [0], [1], [0, 0, 1, 1], [], []>} : vector<2x256xf32>, vector<256x16xf32>, vector<2x16xf32> -> vector<2x16xf32>
    %cst_32 = arith.constant dense<0xFF800000> : vector<2xf32>
    %104 = vector.multi_reduction <maximumf>, %103, %cst_32 [1] : vector<2x16xf32> to vector<2xf32>
    %105 = vector.shape_cast %104 : vector<2xf32> to vector<2x1xf32>
    %106 = vector.broadcast %105 : vector<2x1xf32> to vector<2x16xf32>
    %107 = arith.subf %103, %106 : vector<2x16xf32>
    %108 = math.exp %107 : vector<2x16xf32>
    %cst_33 = arith.constant dense<0.000000e+00> : vector<2xf32>
    %109 = vector.multi_reduction <add>, %108, %cst_33 [1] : vector<2x16xf32> to vector<2xf32>
    %110 = vector.shape_cast %109 : vector<2xf32> to vector<2x1xf32>
    %111 = vector.broadcast %110 : vector<2x1xf32> to vector<2x16xf32>
    %112 = arith.divf %108, %111 : vector<2x16xf32>
    %cst_34 = arith.constant dense<0.000000e+00> : vector<2x128xf32>
    %113 = tpu.matmul %112, %18, %cst_34 {dimension_numbers = #tpu.dot_dimension_numbers<[1], [0], [0], [1], [0, 0, 1, 1], [], []>} : vector<2x16xf32>, vector<16x128xf32>, vector<2x128xf32> -> vector<2x128xf32>
    %114 = arith.mulf %23, %113 : vector<2x128xf32>
    %cst_35 = arith.constant dense<0.000000e+00> : vector<2x64xf32>
    %115 = tpu.matmul %114, %5, %cst_35 {dimension_numbers = #tpu.dot_dimension_numbers<[1], [0], [0], [1], [0, 0, 1, 1], [], []>} : vector<2x128xf32>, vector<128x64xf32>, vector<2x64xf32> -> vector<2x64xf32>
    %116 = vector.broadcast %99 : vector<2x1xf32> to vector<2x64xf32>
    %117 = arith.mulf %115, %116 : vector<2x64xf32>
    %118 = vector.extract_strided_slice %7 {offsets = [0, 128], sizes = [2, 64], strides = [1, 1]} : vector<2x896xf32> to vector<2x64xf32>
    %119 = arith.addf %118, %93 : vector<2x64xf32>
    %120 = arith.addf %119, %117 : vector<2x64xf32>
    %121 = vector.extract_strided_slice %120 {offsets = [0, 0], sizes = [2, 16], strides = [1, 1]} : vector<2x64xf32> to vector<2x16xf32>
    %122 = arith.negf %121 : vector<2x16xf32>
    %123 = math.exp %122 : vector<2x16xf32>
    %cst_36 = arith.constant 1.000000e+00 : f32
    %124 = vector.broadcast %cst_36 : f32 to vector<2x16xf32>
    %125 = arith.addf %124, %123 : vector<2x16xf32>
    %126 = arith.divf %124, %125 : vector<2x16xf32>
    %127 = vector.extract_strided_slice %120 {offsets = [0, 16], sizes = [2, 16], strides = [1, 1]} : vector<2x64xf32> to vector<2x16xf32>
    %128 = arith.negf %127 : vector<2x16xf32>
    %129 = math.exp %128 : vector<2x16xf32>
    %cst_37 = arith.constant 1.000000e+00 : f32
    %130 = vector.broadcast %cst_37 : f32 to vector<2x16xf32>
    %131 = arith.addf %130, %129 : vector<2x16xf32>
    %132 = arith.divf %130, %131 : vector<2x16xf32>
    %133 = vector.extract_strided_slice %120 {offsets = [0, 32], sizes = [2, 16], strides = [1, 1]} : vector<2x64xf32> to vector<2x16xf32>
    %134 = math.tanh %133 : vector<2x16xf32>
    %135 = vector.extract_strided_slice %120 {offsets = [0, 48], sizes = [2, 16], strides = [1, 1]} : vector<2x64xf32> to vector<2x16xf32>
    %136 = arith.negf %135 : vector<2x16xf32>
    %137 = math.exp %136 : vector<2x16xf32>
    %cst_38 = arith.constant 1.000000e+00 : f32
    %138 = vector.broadcast %cst_38 : f32 to vector<2x16xf32>
    %139 = arith.addf %138, %137 : vector<2x16xf32>
    %140 = arith.divf %138, %139 : vector<2x16xf32>
    %141 = arith.mulf %132, %85 : vector<2x16xf32>
    %142 = arith.mulf %126, %134 : vector<2x16xf32>
    %143 = arith.addf %141, %142 : vector<2x16xf32>
    %144 = math.tanh %143 : vector<2x16xf32>
    %145 = arith.mulf %140, %144 : vector<2x16xf32>
    %cst_39 = arith.constant dense<0.000000e+00> : vector<2x512xf32>
    %146 = tpu.matmul %145, %6, %cst_39 {dimension_numbers = #tpu.dot_dimension_numbers<[1], [0], [0], [1], [0, 0, 1, 1], [], []>} : vector<2x16xf32>, vector<16x512xf32>, vector<2x512xf32> -> vector<2x512xf32>
    %147 = vector.broadcast %3 : vector<1x512xf32> to vector<2x512xf32>
    %148 = arith.addf %146, %147 : vector<2x512xf32>
    %149 = vector.extract_strided_slice %148 {offsets = [0, 384], sizes = [2, 32], strides = [1, 1]} : vector<2x512xf32> to vector<2x32xf32>
    %150 = vector.extract_strided_slice %148 {offsets = [0, 0], sizes = [2, 256], strides = [1, 1]} : vector<2x512xf32> to vector<2x256xf32>
    %151 = vector.extract_strided_slice %148 {offsets = [0, 256], sizes = [2, 64], strides = [1, 1]} : vector<2x512xf32> to vector<2x64xf32>
    %152 = vector.extract_strided_slice %148 {offsets = [0, 416], sizes = [2, 1], strides = [1, 1]} : vector<2x512xf32> to vector<2x1xf32>
    %153 = arith.negf %152 : vector<2x1xf32>
    %154 = math.exp %153 : vector<2x1xf32>
    %cst_40 = arith.constant 1.000000e+00 : f32
    %155 = vector.broadcast %cst_40 : f32 to vector<2x1xf32>
    %156 = arith.addf %155, %154 : vector<2x1xf32>
    %157 = arith.divf %155, %156 : vector<2x1xf32>
    %158 = arith.addf %28, %150 : vector<2x256xf32>
    %cst_41 = arith.constant 0.000000e+00 : f32
    %159 = vector.broadcast %cst_41 : f32 to vector<2x256xf32>
    %160 = arith.maximumf %158, %159 : vector<2x256xf32>
    %cst_42 = arith.constant dense<0.000000e+00> : vector<2x16xf32>
    %161 = tpu.matmul %160, %4, %cst_42 {dimension_numbers = #tpu.dot_dimension_numbers<[1], [0], [0], [1], [0, 0, 1, 1], [], []>} : vector<2x256xf32>, vector<256x16xf32>, vector<2x16xf32> -> vector<2x16xf32>
    %cst_43 = arith.constant dense<0xFF800000> : vector<2xf32>
    %162 = vector.multi_reduction <maximumf>, %161, %cst_43 [1] : vector<2x16xf32> to vector<2xf32>
    %163 = vector.shape_cast %162 : vector<2xf32> to vector<2x1xf32>
    %164 = vector.broadcast %163 : vector<2x1xf32> to vector<2x16xf32>
    %165 = arith.subf %161, %164 : vector<2x16xf32>
    %166 = math.exp %165 : vector<2x16xf32>
    %cst_44 = arith.constant dense<0.000000e+00> : vector<2xf32>
    %167 = vector.multi_reduction <add>, %166, %cst_44 [1] : vector<2x16xf32> to vector<2xf32>
    %168 = vector.shape_cast %167 : vector<2xf32> to vector<2x1xf32>
    %169 = vector.broadcast %168 : vector<2x1xf32> to vector<2x16xf32>
    %170 = arith.divf %166, %169 : vector<2x16xf32>
    %cst_45 = arith.constant dense<0.000000e+00> : vector<2x128xf32>
    %171 = tpu.matmul %170, %18, %cst_45 {dimension_numbers = #tpu.dot_dimension_numbers<[1], [0], [0], [1], [0, 0, 1, 1], [], []>} : vector<2x16xf32>, vector<16x128xf32>, vector<2x128xf32> -> vector<2x128xf32>
    %172 = arith.mulf %23, %171 : vector<2x128xf32>
    %cst_46 = arith.constant dense<0.000000e+00> : vector<2x64xf32>
    %173 = tpu.matmul %172, %5, %cst_46 {dimension_numbers = #tpu.dot_dimension_numbers<[1], [0], [0], [1], [0, 0, 1, 1], [], []>} : vector<2x128xf32>, vector<128x64xf32>, vector<2x64xf32> -> vector<2x64xf32>
    %174 = vector.broadcast %157 : vector<2x1xf32> to vector<2x64xf32>
    %175 = arith.mulf %173, %174 : vector<2x64xf32>
    %176 = vector.extract_strided_slice %7 {offsets = [0, 256], sizes = [2, 64], strides = [1, 1]} : vector<2x896xf32> to vector<2x64xf32>
    %177 = arith.addf %176, %151 : vector<2x64xf32>
    %178 = arith.addf %177, %175 : vector<2x64xf32>
    %179 = vector.extract_strided_slice %178 {offsets = [0, 0], sizes = [2, 16], strides = [1, 1]} : vector<2x64xf32> to vector<2x16xf32>
    %180 = arith.negf %179 : vector<2x16xf32>
    %181 = math.exp %180 : vector<2x16xf32>
    %cst_47 = arith.constant 1.000000e+00 : f32
    %182 = vector.broadcast %cst_47 : f32 to vector<2x16xf32>
    %183 = arith.addf %182, %181 : vector<2x16xf32>
    %184 = arith.divf %182, %183 : vector<2x16xf32>
    %185 = vector.extract_strided_slice %178 {offsets = [0, 16], sizes = [2, 16], strides = [1, 1]} : vector<2x64xf32> to vector<2x16xf32>
    %186 = arith.negf %185 : vector<2x16xf32>
    %187 = math.exp %186 : vector<2x16xf32>
    %cst_48 = arith.constant 1.000000e+00 : f32
    %188 = vector.broadcast %cst_48 : f32 to vector<2x16xf32>
    %189 = arith.addf %188, %187 : vector<2x16xf32>
    %190 = arith.divf %188, %189 : vector<2x16xf32>
    %191 = vector.extract_strided_slice %178 {offsets = [0, 32], sizes = [2, 16], strides = [1, 1]} : vector<2x64xf32> to vector<2x16xf32>
    %192 = math.tanh %191 : vector<2x16xf32>
    %193 = vector.extract_strided_slice %178 {offsets = [0, 48], sizes = [2, 16], strides = [1, 1]} : vector<2x64xf32> to vector<2x16xf32>
    %194 = arith.negf %193 : vector<2x16xf32>
    %195 = math.exp %194 : vector<2x16xf32>
    %cst_49 = arith.constant 1.000000e+00 : f32
    %196 = vector.broadcast %cst_49 : f32 to vector<2x16xf32>
    %197 = arith.addf %196, %195 : vector<2x16xf32>
    %198 = arith.divf %196, %197 : vector<2x16xf32>
    %199 = arith.mulf %190, %143 : vector<2x16xf32>
    %200 = arith.mulf %184, %192 : vector<2x16xf32>
    %201 = arith.addf %199, %200 : vector<2x16xf32>
    %202 = math.tanh %201 : vector<2x16xf32>
    %203 = arith.mulf %198, %202 : vector<2x16xf32>
    %cst_50 = arith.constant dense<0.000000e+00> : vector<2x512xf32>
    %204 = tpu.matmul %203, %6, %cst_50 {dimension_numbers = #tpu.dot_dimension_numbers<[1], [0], [0], [1], [0, 0, 1, 1], [], []>} : vector<2x16xf32>, vector<16x512xf32>, vector<2x512xf32> -> vector<2x512xf32>
    %205 = vector.broadcast %3 : vector<1x512xf32> to vector<2x512xf32>
    %206 = arith.addf %204, %205 : vector<2x512xf32>
    %207 = vector.extract_strided_slice %206 {offsets = [0, 384], sizes = [2, 32], strides = [1, 1]} : vector<2x512xf32> to vector<2x32xf32>
    %208 = vector.extract_strided_slice %206 {offsets = [0, 0], sizes = [2, 256], strides = [1, 1]} : vector<2x512xf32> to vector<2x256xf32>
    %209 = vector.extract_strided_slice %206 {offsets = [0, 256], sizes = [2, 64], strides = [1, 1]} : vector<2x512xf32> to vector<2x64xf32>
    %210 = vector.extract_strided_slice %206 {offsets = [0, 416], sizes = [2, 1], strides = [1, 1]} : vector<2x512xf32> to vector<2x1xf32>
    %211 = arith.negf %210 : vector<2x1xf32>
    %212 = math.exp %211 : vector<2x1xf32>
    %cst_51 = arith.constant 1.000000e+00 : f32
    %213 = vector.broadcast %cst_51 : f32 to vector<2x1xf32>
    %214 = arith.addf %213, %212 : vector<2x1xf32>
    %215 = arith.divf %213, %214 : vector<2x1xf32>
    %216 = arith.addf %28, %208 : vector<2x256xf32>
    %cst_52 = arith.constant 0.000000e+00 : f32
    %217 = vector.broadcast %cst_52 : f32 to vector<2x256xf32>
    %218 = arith.maximumf %216, %217 : vector<2x256xf32>
    %cst_53 = arith.constant dense<0.000000e+00> : vector<2x16xf32>
    %219 = tpu.matmul %218, %4, %cst_53 {dimension_numbers = #tpu.dot_dimension_numbers<[1], [0], [0], [1], [0, 0, 1, 1], [], []>} : vector<2x256xf32>, vector<256x16xf32>, vector<2x16xf32> -> vector<2x16xf32>
    %cst_54 = arith.constant dense<0xFF800000> : vector<2xf32>
    %220 = vector.multi_reduction <maximumf>, %219, %cst_54 [1] : vector<2x16xf32> to vector<2xf32>
    %221 = vector.shape_cast %220 : vector<2xf32> to vector<2x1xf32>
    %222 = vector.broadcast %221 : vector<2x1xf32> to vector<2x16xf32>
    %223 = arith.subf %219, %222 : vector<2x16xf32>
    %224 = math.exp %223 : vector<2x16xf32>
    %cst_55 = arith.constant dense<0.000000e+00> : vector<2xf32>
    %225 = vector.multi_reduction <add>, %224, %cst_55 [1] : vector<2x16xf32> to vector<2xf32>
    %226 = vector.shape_cast %225 : vector<2xf32> to vector<2x1xf32>
    %227 = vector.broadcast %226 : vector<2x1xf32> to vector<2x16xf32>
    %228 = arith.divf %224, %227 : vector<2x16xf32>
    %cst_56 = arith.constant dense<0.000000e+00> : vector<2x128xf32>
    %229 = tpu.matmul %228, %18, %cst_56 {dimension_numbers = #tpu.dot_dimension_numbers<[1], [0], [0], [1], [0, 0, 1, 1], [], []>} : vector<2x16xf32>, vector<16x128xf32>, vector<2x128xf32> -> vector<2x128xf32>
    %230 = arith.mulf %23, %229 : vector<2x128xf32>
    %cst_57 = arith.constant dense<0.000000e+00> : vector<2x64xf32>
    %231 = tpu.matmul %230, %5, %cst_57 {dimension_numbers = #tpu.dot_dimension_numbers<[1], [0], [0], [1], [0, 0, 1, 1], [], []>} : vector<2x128xf32>, vector<128x64xf32>, vector<2x64xf32> -> vector<2x64xf32>
    %232 = vector.broadcast %215 : vector<2x1xf32> to vector<2x64xf32>
    %233 = arith.mulf %231, %232 : vector<2x64xf32>
    %234 = vector.extract_strided_slice %7 {offsets = [0, 384], sizes = [2, 64], strides = [1, 1]} : vector<2x896xf32> to vector<2x64xf32>
    %235 = arith.addf %234, %209 : vector<2x64xf32>
    %236 = arith.addf %235, %233 : vector<2x64xf32>
    %237 = vector.extract_strided_slice %236 {offsets = [0, 0], sizes = [2, 16], strides = [1, 1]} : vector<2x64xf32> to vector<2x16xf32>
    %238 = arith.negf %237 : vector<2x16xf32>
    %239 = math.exp %238 : vector<2x16xf32>
    %cst_58 = arith.constant 1.000000e+00 : f32
    %240 = vector.broadcast %cst_58 : f32 to vector<2x16xf32>
    %241 = arith.addf %240, %239 : vector<2x16xf32>
    %242 = arith.divf %240, %241 : vector<2x16xf32>
    %243 = vector.extract_strided_slice %236 {offsets = [0, 16], sizes = [2, 16], strides = [1, 1]} : vector<2x64xf32> to vector<2x16xf32>
    %244 = arith.negf %243 : vector<2x16xf32>
    %245 = math.exp %244 : vector<2x16xf32>
    %cst_59 = arith.constant 1.000000e+00 : f32
    %246 = vector.broadcast %cst_59 : f32 to vector<2x16xf32>
    %247 = arith.addf %246, %245 : vector<2x16xf32>
    %248 = arith.divf %246, %247 : vector<2x16xf32>
    %249 = vector.extract_strided_slice %236 {offsets = [0, 32], sizes = [2, 16], strides = [1, 1]} : vector<2x64xf32> to vector<2x16xf32>
    %250 = math.tanh %249 : vector<2x16xf32>
    %251 = vector.extract_strided_slice %236 {offsets = [0, 48], sizes = [2, 16], strides = [1, 1]} : vector<2x64xf32> to vector<2x16xf32>
    %252 = arith.negf %251 : vector<2x16xf32>
    %253 = math.exp %252 : vector<2x16xf32>
    %cst_60 = arith.constant 1.000000e+00 : f32
    %254 = vector.broadcast %cst_60 : f32 to vector<2x16xf32>
    %255 = arith.addf %254, %253 : vector<2x16xf32>
    %256 = arith.divf %254, %255 : vector<2x16xf32>
    %257 = arith.mulf %248, %201 : vector<2x16xf32>
    %258 = arith.mulf %242, %250 : vector<2x16xf32>
    %259 = arith.addf %257, %258 : vector<2x16xf32>
    %260 = math.tanh %259 : vector<2x16xf32>
    %261 = arith.mulf %256, %260 : vector<2x16xf32>
    %cst_61 = arith.constant dense<0.000000e+00> : vector<2x512xf32>
    %262 = tpu.matmul %261, %6, %cst_61 {dimension_numbers = #tpu.dot_dimension_numbers<[1], [0], [0], [1], [0, 0, 1, 1], [], []>} : vector<2x16xf32>, vector<16x512xf32>, vector<2x512xf32> -> vector<2x512xf32>
    %263 = vector.broadcast %3 : vector<1x512xf32> to vector<2x512xf32>
    %264 = arith.addf %262, %263 : vector<2x512xf32>
    %265 = vector.extract_strided_slice %264 {offsets = [0, 384], sizes = [2, 32], strides = [1, 1]} : vector<2x512xf32> to vector<2x32xf32>
    %266 = vector.extract_strided_slice %264 {offsets = [0, 0], sizes = [2, 256], strides = [1, 1]} : vector<2x512xf32> to vector<2x256xf32>
    %267 = vector.extract_strided_slice %264 {offsets = [0, 256], sizes = [2, 64], strides = [1, 1]} : vector<2x512xf32> to vector<2x64xf32>
    %268 = vector.extract_strided_slice %264 {offsets = [0, 416], sizes = [2, 1], strides = [1, 1]} : vector<2x512xf32> to vector<2x1xf32>
    %269 = arith.negf %268 : vector<2x1xf32>
    %270 = math.exp %269 : vector<2x1xf32>
    %cst_62 = arith.constant 1.000000e+00 : f32
    %271 = vector.broadcast %cst_62 : f32 to vector<2x1xf32>
    %272 = arith.addf %271, %270 : vector<2x1xf32>
    %273 = arith.divf %271, %272 : vector<2x1xf32>
    %274 = arith.addf %28, %266 : vector<2x256xf32>
    %cst_63 = arith.constant 0.000000e+00 : f32
    %275 = vector.broadcast %cst_63 : f32 to vector<2x256xf32>
    %276 = arith.maximumf %274, %275 : vector<2x256xf32>
    %cst_64 = arith.constant dense<0.000000e+00> : vector<2x16xf32>
    %277 = tpu.matmul %276, %4, %cst_64 {dimension_numbers = #tpu.dot_dimension_numbers<[1], [0], [0], [1], [0, 0, 1, 1], [], []>} : vector<2x256xf32>, vector<256x16xf32>, vector<2x16xf32> -> vector<2x16xf32>
    %cst_65 = arith.constant dense<0xFF800000> : vector<2xf32>
    %278 = vector.multi_reduction <maximumf>, %277, %cst_65 [1] : vector<2x16xf32> to vector<2xf32>
    %279 = vector.shape_cast %278 : vector<2xf32> to vector<2x1xf32>
    %280 = vector.broadcast %279 : vector<2x1xf32> to vector<2x16xf32>
    %281 = arith.subf %277, %280 : vector<2x16xf32>
    %282 = math.exp %281 : vector<2x16xf32>
    %cst_66 = arith.constant dense<0.000000e+00> : vector<2xf32>
    %283 = vector.multi_reduction <add>, %282, %cst_66 [1] : vector<2x16xf32> to vector<2xf32>
    %284 = vector.shape_cast %283 : vector<2xf32> to vector<2x1xf32>
    %285 = vector.broadcast %284 : vector<2x1xf32> to vector<2x16xf32>
    %286 = arith.divf %282, %285 : vector<2x16xf32>
    %cst_67 = arith.constant dense<0.000000e+00> : vector<2x128xf32>
    %287 = tpu.matmul %286, %18, %cst_67 {dimension_numbers = #tpu.dot_dimension_numbers<[1], [0], [0], [1], [0, 0, 1, 1], [], []>} : vector<2x16xf32>, vector<16x128xf32>, vector<2x128xf32> -> vector<2x128xf32>
    %288 = arith.mulf %23, %287 : vector<2x128xf32>
    %cst_68 = arith.constant dense<0.000000e+00> : vector<2x64xf32>
    %289 = tpu.matmul %288, %5, %cst_68 {dimension_numbers = #tpu.dot_dimension_numbers<[1], [0], [0], [1], [0, 0, 1, 1], [], []>} : vector<2x128xf32>, vector<128x64xf32>, vector<2x64xf32> -> vector<2x64xf32>
    %290 = vector.broadcast %273 : vector<2x1xf32> to vector<2x64xf32>
    %291 = arith.mulf %289, %290 : vector<2x64xf32>
    %292 = vector.extract_strided_slice %7 {offsets = [0, 512], sizes = [2, 64], strides = [1, 1]} : vector<2x896xf32> to vector<2x64xf32>
    %293 = arith.addf %292, %267 : vector<2x64xf32>
    %294 = arith.addf %293, %291 : vector<2x64xf32>
    %295 = vector.extract_strided_slice %294 {offsets = [0, 0], sizes = [2, 16], strides = [1, 1]} : vector<2x64xf32> to vector<2x16xf32>
    %296 = arith.negf %295 : vector<2x16xf32>
    %297 = math.exp %296 : vector<2x16xf32>
    %cst_69 = arith.constant 1.000000e+00 : f32
    %298 = vector.broadcast %cst_69 : f32 to vector<2x16xf32>
    %299 = arith.addf %298, %297 : vector<2x16xf32>
    %300 = arith.divf %298, %299 : vector<2x16xf32>
    %301 = vector.extract_strided_slice %294 {offsets = [0, 16], sizes = [2, 16], strides = [1, 1]} : vector<2x64xf32> to vector<2x16xf32>
    %302 = arith.negf %301 : vector<2x16xf32>
    %303 = math.exp %302 : vector<2x16xf32>
    %cst_70 = arith.constant 1.000000e+00 : f32
    %304 = vector.broadcast %cst_70 : f32 to vector<2x16xf32>
    %305 = arith.addf %304, %303 : vector<2x16xf32>
    %306 = arith.divf %304, %305 : vector<2x16xf32>
    %307 = vector.extract_strided_slice %294 {offsets = [0, 32], sizes = [2, 16], strides = [1, 1]} : vector<2x64xf32> to vector<2x16xf32>
    %308 = math.tanh %307 : vector<2x16xf32>
    %309 = vector.extract_strided_slice %294 {offsets = [0, 48], sizes = [2, 16], strides = [1, 1]} : vector<2x64xf32> to vector<2x16xf32>
    %310 = arith.negf %309 : vector<2x16xf32>
    %311 = math.exp %310 : vector<2x16xf32>
    %cst_71 = arith.constant 1.000000e+00 : f32
    %312 = vector.broadcast %cst_71 : f32 to vector<2x16xf32>
    %313 = arith.addf %312, %311 : vector<2x16xf32>
    %314 = arith.divf %312, %313 : vector<2x16xf32>
    %315 = arith.mulf %306, %259 : vector<2x16xf32>
    %316 = arith.mulf %300, %308 : vector<2x16xf32>
    %317 = arith.addf %315, %316 : vector<2x16xf32>
    %318 = math.tanh %317 : vector<2x16xf32>
    %319 = arith.mulf %314, %318 : vector<2x16xf32>
    %cst_72 = arith.constant dense<0.000000e+00> : vector<2x512xf32>
    %320 = tpu.matmul %319, %6, %cst_72 {dimension_numbers = #tpu.dot_dimension_numbers<[1], [0], [0], [1], [0, 0, 1, 1], [], []>} : vector<2x16xf32>, vector<16x512xf32>, vector<2x512xf32> -> vector<2x512xf32>
    %321 = vector.broadcast %3 : vector<1x512xf32> to vector<2x512xf32>
    %322 = arith.addf %320, %321 : vector<2x512xf32>
    %323 = vector.extract_strided_slice %322 {offsets = [0, 384], sizes = [2, 32], strides = [1, 1]} : vector<2x512xf32> to vector<2x32xf32>
    %324 = vector.extract_strided_slice %322 {offsets = [0, 0], sizes = [2, 256], strides = [1, 1]} : vector<2x512xf32> to vector<2x256xf32>
    %325 = vector.extract_strided_slice %322 {offsets = [0, 256], sizes = [2, 64], strides = [1, 1]} : vector<2x512xf32> to vector<2x64xf32>
    %326 = vector.extract_strided_slice %322 {offsets = [0, 416], sizes = [2, 1], strides = [1, 1]} : vector<2x512xf32> to vector<2x1xf32>
    %327 = arith.negf %326 : vector<2x1xf32>
    %328 = math.exp %327 : vector<2x1xf32>
    %cst_73 = arith.constant 1.000000e+00 : f32
    %329 = vector.broadcast %cst_73 : f32 to vector<2x1xf32>
    %330 = arith.addf %329, %328 : vector<2x1xf32>
    %331 = arith.divf %329, %330 : vector<2x1xf32>
    %332 = arith.addf %28, %324 : vector<2x256xf32>
    %cst_74 = arith.constant 0.000000e+00 : f32
    %333 = vector.broadcast %cst_74 : f32 to vector<2x256xf32>
    %334 = arith.maximumf %332, %333 : vector<2x256xf32>
    %cst_75 = arith.constant dense<0.000000e+00> : vector<2x16xf32>
    %335 = tpu.matmul %334, %4, %cst_75 {dimension_numbers = #tpu.dot_dimension_numbers<[1], [0], [0], [1], [0, 0, 1, 1], [], []>} : vector<2x256xf32>, vector<256x16xf32>, vector<2x16xf32> -> vector<2x16xf32>
    %cst_76 = arith.constant dense<0xFF800000> : vector<2xf32>
    %336 = vector.multi_reduction <maximumf>, %335, %cst_76 [1] : vector<2x16xf32> to vector<2xf32>
    %337 = vector.shape_cast %336 : vector<2xf32> to vector<2x1xf32>
    %338 = vector.broadcast %337 : vector<2x1xf32> to vector<2x16xf32>
    %339 = arith.subf %335, %338 : vector<2x16xf32>
    %340 = math.exp %339 : vector<2x16xf32>
    %cst_77 = arith.constant dense<0.000000e+00> : vector<2xf32>
    %341 = vector.multi_reduction <add>, %340, %cst_77 [1] : vector<2x16xf32> to vector<2xf32>
    %342 = vector.shape_cast %341 : vector<2xf32> to vector<2x1xf32>
    %343 = vector.broadcast %342 : vector<2x1xf32> to vector<2x16xf32>
    %344 = arith.divf %340, %343 : vector<2x16xf32>
    %cst_78 = arith.constant dense<0.000000e+00> : vector<2x128xf32>
    %345 = tpu.matmul %344, %18, %cst_78 {dimension_numbers = #tpu.dot_dimension_numbers<[1], [0], [0], [1], [0, 0, 1, 1], [], []>} : vector<2x16xf32>, vector<16x128xf32>, vector<2x128xf32> -> vector<2x128xf32>
    %346 = arith.mulf %23, %345 : vector<2x128xf32>
    %cst_79 = arith.constant dense<0.000000e+00> : vector<2x64xf32>
    %347 = tpu.matmul %346, %5, %cst_79 {dimension_numbers = #tpu.dot_dimension_numbers<[1], [0], [0], [1], [0, 0, 1, 1], [], []>} : vector<2x128xf32>, vector<128x64xf32>, vector<2x64xf32> -> vector<2x64xf32>
    %348 = vector.broadcast %331 : vector<2x1xf32> to vector<2x64xf32>
    %349 = arith.mulf %347, %348 : vector<2x64xf32>
    %350 = vector.extract_strided_slice %7 {offsets = [0, 640], sizes = [2, 64], strides = [1, 1]} : vector<2x896xf32> to vector<2x64xf32>
    %351 = arith.addf %350, %325 : vector<2x64xf32>
    %352 = arith.addf %351, %349 : vector<2x64xf32>
    %353 = vector.extract_strided_slice %352 {offsets = [0, 0], sizes = [2, 16], strides = [1, 1]} : vector<2x64xf32> to vector<2x16xf32>
    %354 = arith.negf %353 : vector<2x16xf32>
    %355 = math.exp %354 : vector<2x16xf32>
    %cst_80 = arith.constant 1.000000e+00 : f32
    %356 = vector.broadcast %cst_80 : f32 to vector<2x16xf32>
    %357 = arith.addf %356, %355 : vector<2x16xf32>
    %358 = arith.divf %356, %357 : vector<2x16xf32>
    %359 = vector.extract_strided_slice %352 {offsets = [0, 16], sizes = [2, 16], strides = [1, 1]} : vector<2x64xf32> to vector<2x16xf32>
    %360 = arith.negf %359 : vector<2x16xf32>
    %361 = math.exp %360 : vector<2x16xf32>
    %cst_81 = arith.constant 1.000000e+00 : f32
    %362 = vector.broadcast %cst_81 : f32 to vector<2x16xf32>
    %363 = arith.addf %362, %361 : vector<2x16xf32>
    %364 = arith.divf %362, %363 : vector<2x16xf32>
    %365 = vector.extract_strided_slice %352 {offsets = [0, 32], sizes = [2, 16], strides = [1, 1]} : vector<2x64xf32> to vector<2x16xf32>
    %366 = math.tanh %365 : vector<2x16xf32>
    %367 = vector.extract_strided_slice %352 {offsets = [0, 48], sizes = [2, 16], strides = [1, 1]} : vector<2x64xf32> to vector<2x16xf32>
    %368 = arith.negf %367 : vector<2x16xf32>
    %369 = math.exp %368 : vector<2x16xf32>
    %cst_82 = arith.constant 1.000000e+00 : f32
    %370 = vector.broadcast %cst_82 : f32 to vector<2x16xf32>
    %371 = arith.addf %370, %369 : vector<2x16xf32>
    %372 = arith.divf %370, %371 : vector<2x16xf32>
    %373 = arith.mulf %364, %317 : vector<2x16xf32>
    %374 = arith.mulf %358, %366 : vector<2x16xf32>
    %375 = arith.addf %373, %374 : vector<2x16xf32>
    %376 = math.tanh %375 : vector<2x16xf32>
    %377 = arith.mulf %372, %376 : vector<2x16xf32>
    %cst_83 = arith.constant dense<0.000000e+00> : vector<2x512xf32>
    %378 = tpu.matmul %377, %6, %cst_83 {dimension_numbers = #tpu.dot_dimension_numbers<[1], [0], [0], [1], [0, 0, 1, 1], [], []>} : vector<2x16xf32>, vector<16x512xf32>, vector<2x512xf32> -> vector<2x512xf32>
    %379 = vector.broadcast %3 : vector<1x512xf32> to vector<2x512xf32>
    %380 = arith.addf %378, %379 : vector<2x512xf32>
    %381 = vector.extract_strided_slice %380 {offsets = [0, 384], sizes = [2, 32], strides = [1, 1]} : vector<2x512xf32> to vector<2x32xf32>
    %382 = vector.extract_strided_slice %380 {offsets = [0, 0], sizes = [2, 256], strides = [1, 1]} : vector<2x512xf32> to vector<2x256xf32>
    %383 = vector.extract_strided_slice %380 {offsets = [0, 256], sizes = [2, 64], strides = [1, 1]} : vector<2x512xf32> to vector<2x64xf32>
    %384 = vector.extract_strided_slice %380 {offsets = [0, 416], sizes = [2, 1], strides = [1, 1]} : vector<2x512xf32> to vector<2x1xf32>
    %385 = arith.negf %384 : vector<2x1xf32>
    %386 = math.exp %385 : vector<2x1xf32>
    %cst_84 = arith.constant 1.000000e+00 : f32
    %387 = vector.broadcast %cst_84 : f32 to vector<2x1xf32>
    %388 = arith.addf %387, %386 : vector<2x1xf32>
    %389 = arith.divf %387, %388 : vector<2x1xf32>
    %390 = arith.addf %28, %382 : vector<2x256xf32>
    %cst_85 = arith.constant 0.000000e+00 : f32
    %391 = vector.broadcast %cst_85 : f32 to vector<2x256xf32>
    %392 = arith.maximumf %390, %391 : vector<2x256xf32>
    %cst_86 = arith.constant dense<0.000000e+00> : vector<2x16xf32>
    %393 = tpu.matmul %392, %4, %cst_86 {dimension_numbers = #tpu.dot_dimension_numbers<[1], [0], [0], [1], [0, 0, 1, 1], [], []>} : vector<2x256xf32>, vector<256x16xf32>, vector<2x16xf32> -> vector<2x16xf32>
    %cst_87 = arith.constant dense<0xFF800000> : vector<2xf32>
    %394 = vector.multi_reduction <maximumf>, %393, %cst_87 [1] : vector<2x16xf32> to vector<2xf32>
    %395 = vector.shape_cast %394 : vector<2xf32> to vector<2x1xf32>
    %396 = vector.broadcast %395 : vector<2x1xf32> to vector<2x16xf32>
    %397 = arith.subf %393, %396 : vector<2x16xf32>
    %398 = math.exp %397 : vector<2x16xf32>
    %cst_88 = arith.constant dense<0.000000e+00> : vector<2xf32>
    %399 = vector.multi_reduction <add>, %398, %cst_88 [1] : vector<2x16xf32> to vector<2xf32>
    %400 = vector.shape_cast %399 : vector<2xf32> to vector<2x1xf32>
    %401 = vector.broadcast %400 : vector<2x1xf32> to vector<2x16xf32>
    %402 = arith.divf %398, %401 : vector<2x16xf32>
    %cst_89 = arith.constant dense<0.000000e+00> : vector<2x128xf32>
    %403 = tpu.matmul %402, %18, %cst_89 {dimension_numbers = #tpu.dot_dimension_numbers<[1], [0], [0], [1], [0, 0, 1, 1], [], []>} : vector<2x16xf32>, vector<16x128xf32>, vector<2x128xf32> -> vector<2x128xf32>
    %404 = arith.mulf %23, %403 : vector<2x128xf32>
    %cst_90 = arith.constant dense<0.000000e+00> : vector<2x64xf32>
    %405 = tpu.matmul %404, %5, %cst_90 {dimension_numbers = #tpu.dot_dimension_numbers<[1], [0], [0], [1], [0, 0, 1, 1], [], []>} : vector<2x128xf32>, vector<128x64xf32>, vector<2x64xf32> -> vector<2x64xf32>
    %406 = vector.broadcast %389 : vector<2x1xf32> to vector<2x64xf32>
    %407 = arith.mulf %405, %406 : vector<2x64xf32>
    %408 = vector.extract_strided_slice %7 {offsets = [0, 768], sizes = [2, 64], strides = [1, 1]} : vector<2x896xf32> to vector<2x64xf32>
    %409 = arith.addf %408, %383 : vector<2x64xf32>
    %410 = arith.addf %409, %407 : vector<2x64xf32>
    %411 = vector.extract_strided_slice %410 {offsets = [0, 0], sizes = [2, 16], strides = [1, 1]} : vector<2x64xf32> to vector<2x16xf32>
    %412 = arith.negf %411 : vector<2x16xf32>
    %413 = math.exp %412 : vector<2x16xf32>
    %cst_91 = arith.constant 1.000000e+00 : f32
    %414 = vector.broadcast %cst_91 : f32 to vector<2x16xf32>
    %415 = arith.addf %414, %413 : vector<2x16xf32>
    %416 = arith.divf %414, %415 : vector<2x16xf32>
    %417 = vector.extract_strided_slice %410 {offsets = [0, 16], sizes = [2, 16], strides = [1, 1]} : vector<2x64xf32> to vector<2x16xf32>
    %418 = arith.negf %417 : vector<2x16xf32>
    %419 = math.exp %418 : vector<2x16xf32>
    %cst_92 = arith.constant 1.000000e+00 : f32
    %420 = vector.broadcast %cst_92 : f32 to vector<2x16xf32>
    %421 = arith.addf %420, %419 : vector<2x16xf32>
    %422 = arith.divf %420, %421 : vector<2x16xf32>
    %423 = vector.extract_strided_slice %410 {offsets = [0, 32], sizes = [2, 16], strides = [1, 1]} : vector<2x64xf32> to vector<2x16xf32>
    %424 = math.tanh %423 : vector<2x16xf32>
    %425 = vector.extract_strided_slice %410 {offsets = [0, 48], sizes = [2, 16], strides = [1, 1]} : vector<2x64xf32> to vector<2x16xf32>
    %426 = arith.negf %425 : vector<2x16xf32>
    %427 = math.exp %426 : vector<2x16xf32>
    %cst_93 = arith.constant 1.000000e+00 : f32
    %428 = vector.broadcast %cst_93 : f32 to vector<2x16xf32>
    %429 = arith.addf %428, %427 : vector<2x16xf32>
    %430 = arith.divf %428, %429 : vector<2x16xf32>
    %431 = arith.mulf %422, %375 : vector<2x16xf32>
    %432 = arith.mulf %416, %424 : vector<2x16xf32>
    %433 = arith.addf %431, %432 : vector<2x16xf32>
    %434 = math.tanh %433 : vector<2x16xf32>
    %435 = arith.mulf %430, %434 : vector<2x16xf32>
    %cst_94 = arith.constant dense<0.000000e+00> : vector<2x512xf32>
    %436 = tpu.matmul %435, %6, %cst_94 {dimension_numbers = #tpu.dot_dimension_numbers<[1], [0], [0], [1], [0, 0, 1, 1], [], []>} : vector<2x16xf32>, vector<16x512xf32>, vector<2x512xf32> -> vector<2x512xf32>
    %437 = vector.broadcast %3 : vector<1x512xf32> to vector<2x512xf32>
    %438 = arith.addf %436, %437 : vector<2x512xf32>
    %439 = vector.extract_strided_slice %438 {offsets = [0, 384], sizes = [2, 32], strides = [1, 1]} : vector<2x512xf32> to vector<2x32xf32>
    %cst_95 = arith.constant 0.000000e+00 : f32
    %440 = vector.broadcast %cst_95 : f32 to vector<2x176xf32>
    %441 = tpu.concatenate %91, %149, %207, %265, %323, %381, %439, %54, %112, %170, %228, %286, %344, %402, %440 in 1 : vector<2x32xf32>, vector<2x32xf32>, vector<2x32xf32>, vector<2x32xf32>, vector<2x32xf32>, vector<2x32xf32>, vector<2x32xf32>, vector<2x16xf32>, vector<2x16xf32>, vector<2x16xf32>, vector<2x16xf32>, vector<2x16xf32>, vector<2x16xf32>, vector<2x16xf32>, vector<2x176xf32> -> vector<2x512xf32>
    %c0_96 = arith.constant 0 : index
    %c0_97 = arith.constant 0 : index
    %442 = vector.load %arg8[%c0_96, %c0_97] : memref<2x512xf32, #tpu.memory_space<vmem>>, vector<2x512xf32>
    tpu.vector_store %arg8[%c0_96, %c0_97], %441 {strides = array<i32>} : memref<2x512xf32, #tpu.memory_space<vmem>>, vector<2x512xf32>,
    return
  }
}

</mosaic_0001>

<bundles_post_ra>
// kernel: forward.1
= control target key start
LH: loop header
LB: loop body
LE: loop exit
PB: predicated region body
PF: predicated region fallthrough
CT: control target
= control target key end

     0   :  { %v4999_v0 = vmov 0.0|0.0   ;;  %vm5000_vm0 = vmmov 0   ;;  %v5001_v4 = vmov 0.0   ;;  %vm121_vm1 = vcmask 392192   ;;  %s5004_s10 = smov 96   ;;  %s5008_s11 = smov 80   ;;  %s6105_s2 = inlined_call_operand.vmem [shape: f32[48,128], index: 2, kind: input, shape index: {}]   ;;  %s6106_s3 = inlined_call_operand.vmem [shape: f32[128,288], index: 3, kind: input, shape index: {}]   ;;  %s6107_s0 = inlined_call_operand.vmem [shape: f32[2,48], index: 0, kind: input, shape index: {}]   ;;  %s6108_s6 = inlined_call_operand.vmem [shape: f32[16,512], index: 6, kind: input, shape index: {}]   ;;  %s6109_s7 = inlined_call_operand.vmem [shape: f32[8,512], index: 7, kind: input, shape index: {}]   ;;  %s6110_s4 = inlined_call_operand.vmem [shape: f32[256,16], index: 4, kind: input, shape index: {}]   ;;  %s6111_s5 = inlined_call_operand.vmem [shape: f32[128,64], index: 5, kind: input, shape index: {}]   ;;  %s6112_s1 = inlined_call_operand.vmem [shape: f32[2,896], index: 1, kind: input, shape index: {}]   ;;  %s6113_s8 = inlined_call_operand.vmem [shape: f32[2,512], index: 8, kind: output, shape index: {}]  }
   0x1   :  { %4334 = vmatprep.subr.bf16.mxu0 %v4999_v0  ;;  %v111_v1 = vld [vmem:[%s6105_s2] sm:$0xff]  ;;  %v112_v2 = vld [vmem:[%s6105_s2 + $0x8] sm:$0xff]  ;;  %v113_v3 = vld [vmem:[%s6105_s2 + $0x10] sm:$0xff]  ;;  %4002 = vmatprep.mubr.msk.f32.mxu0 %vm5000_vm0, %v5001_v4  ;;  %vm412_vm2 = vcmask 130048   ;;  %vm638_vm3 = vcmask 123904   ;;  %s5010_s14 = smov 48  }
   0x2   :  { %v4335_v5 = vpack.c.bf16 %v112_v2, %v111_v1  ;;  %v114_v6 = vld [vmem:[%s6105_s2 + $0x18] sm:$0xff]  ;;  %319 = vmatprep.mubr.f32.mxu1 %v5001_v4  ;;  %v196_v7 = vld [vmem:[%s6106_s3 + $0x8] sm:$0xff]  ;;  %v199_v8 = vld [vmem:[%s6106_s3 + $0x20] sm:$0xff]  ;;  %s5011_s15 = smov 112   ;;  %vm3484_vm11 = vcmask 261120   ;;  %vm3486_vm12 = vcmask 523264  }
   0x3   :  { %v4338_v9 = vpack.c.bf16 %v114_v6, %v113_v3  ;;  %v115_v10 = vld [vmem:[%s6105_s2 + $0x20] sm:$0xff]  ;;  %v4343_v11 = vpack.c.bf16 %v199_v8, %v196_v7  ;;  %v198_v13 = vld [vmem:[%s6106_s3 + $0x18] sm:$0xff]  ;;  %v116_v14 = vld [vmem:[%s6105_s2 + $0x28] sm:$0xff]  ;;  %s5005_s2 = smov 16   ;;  %vm3499_vm13 = vcmask 654336   ;;  %vm3488_vm14 = vcmask 785408  }
   0x4   :  { %4336 = vmatpush3.bf16.msra.mxu0 %v4335_v5  ;;  %v195_v12 = vld [vmem:[%s6106_s3] sm:$0xff]  ;;  %v202_v16 = vld [vmem:[%s6106_s3 + $0x38] sm:$0xff]  ;;  %v205_v17 = vld [vmem:[%s6106_s3 + $0x50] sm:$0xff]  ;;  %v4341_v24 = vpack.c.bf16 %v116_v14, %v115_v10  ;;  %vm3493_vm15 = vcmask 916480  }
   0x5   :  { %4337 = vmatprep.subr.bf16.mxu0 %v4999_v0  ;;  %v4345_v15 = vpack.c.bf16 %v198_v13, %v195_v12  ;;  %4344 = vmatprep.subr.bf16.mxu1 %v4343_v11  ;;  %v4347_v18 = vpack.c.bf16 %v205_v17, %v202_v16  ;;  %v201_v19 = vld [vmem:[%s6106_s3 + $0x30] sm:$0xff]  ;;  %v204_v20 = vld [vmem:[%s6106_s3 + $0x48] sm:$0xff]  ;;  %v211_v23 = vld [vmem:[%s6106_s3 + $0x80] sm:$0xff] }
   0x6   :  { %v4349_v21 = vpack.c.bf16 %v204_v20, %v201_v19  ;;  %v208_v22 = vld [vmem:[%s6106_s3 + $0x68] sm:$0xff]  ;;  %v197_v25 = vld [vmem:[%s6106_s3 + $0x10] sm:$0xff]  ;;  %v207_v27 = vld [vmem:[%s6106_s3 + $0x60] sm:$0xff] }
   0x7   :  { %4346 = vmatpush1.bf16.msra.mxu1 %v4345_v15  ;;  %v4351_v26 = vpack.c.bf16 %v211_v23, %v208_v22  ;;  %v210_v28 = vld [vmem:[%s6106_s3 + $0x78] sm:$0xff]  ;;  %v200_v29 = vld [vmem:[%s6106_s3 + $0x28] sm:$0xff]  ;;  %v217_v31 = vld [vmem:[%s6106_s3 + $0xb0] sm:$0xff] }
   0x8   :  { %4339 = vmatpush3.bf16.msra.mxu0 %v4338_v9  ;;  %4348 = vmatprep.subr.bf16.mxu1 %v4347_v18  ;;  %v214_v30 = vld [vmem:[%s6106_s3 + $0x98] sm:$0xff]  ;;  %v110_v32 = vld [vmem:[%s6107_s0] sm:$0x3]  ;;  %v4353_v33 = vpack.c.bf16 %v210_v28, %v207_v27  ;;  %v4376_v34 = vpack.c.bf16 %v200_v29, %v197_v25  ;;  %v213_v37 = vld [vmem:[%s6106_s3 + $0x90] sm:$0xff]  ;;  %v91_v25 = vlaneseq  ;;  %s5006_s0 = smov 32  }
   0x9   :  { %4340 = vmatprep.subr.bf16.mxu0 %v4999_v0  ;;  %v203_v35 = vld [vmem:[%s6106_s3 + $0x40] sm:$0xff]  ;;  %v4355_v36 = vpack.c.bf16 %v217_v31, %v214_v30  ;;  %v216_v38 = vld [vmem:[%s6106_s3 + $0xa8] sm:$0xff]  ;;  %v206_v39 = vld [vmem:[%s6106_s3 + $0x58] sm:$0xff] }
   0xa   :  { %v220_v40 = vld [vmem:[%s6106_s3 + $0xc8] sm:$0xff]  ;;  %v223_v41 = vld [vmem:[%s6106_s3 + $0xe0] sm:$0xff]  ;;  %v4357_v42 = vpack.c.bf16 %v216_v38, %v213_v37  ;;  %v4379_v43 = vpack.c.bf16 %v206_v39, %v203_v35  ;;  %v209_v44 = vld [vmem:[%s6106_s3 + $0x70] sm:$0xff] }
   0xb   :  { %4350 = vmatpush1.bf16.msra.mxu1 %v4349_v21  ;;  %v4359_v45 = vpack.c.bf16 %v223_v41, %v220_v40  ;;  %v219_v46 = vld [vmem:[%s6106_s3 + $0xc0] sm:$0xff]  ;;  %v222_v47 = vld [vmem:[%s6106_s3 + $0xd8] sm:$0xff]  ;;  %v212_v48 = vld [vmem:[%s6106_s3 + $0x88] sm:$0xff] }
   0xc   :  { %4342 = vmatpush3.bf16.msra.mxu0 %v4341_v24  ;;  %4352 = vmatprep.subr.bf16.mxu1 %v4351_v26  ;;  %v226_v49 = vld [vmem:[%s6106_s3 + $0xf8] sm:$0xff]  ;;  %v229_v50 = vld [vmem:[%s6106_s3 + $0x110] sm:$0xff]  ;;  %v4361_v51 = vpack.c.bf16 %v222_v47, %v219_v46  ;;  %v4382_v52 = vpack.c.bf16 %v212_v48, %v209_v44  ;;  %v215_v53 = vld [vmem:[%s6106_s3 + $0xa0] sm:$0xff]  ;;  %v5250_v26 = vshrl.u32 %v91_v25, 7 }
   0xd   :  { %4375 = vmatprep.subr.bf16.mxu0 %v4999_v0  ;;  %v4363_v54 = vpack.c.bf16 %v229_v50, %v226_v49  ;;  %v225_v55 = vld [vmem:[%s6106_s3 + $0xf0] sm:$0xff]  ;;  %v228_v56 = vld [vmem:[%s6106_s3 + $0x108] sm:$0xff]  ;;  %v218_v57 = vld [vmem:[%s6106_s3 + $0xb8] sm:$0xff] }
   0xe   :  { %v232_v58 = vld [vmem:[%s6106_s3 + $0x128] sm:$0xff]  ;;  %v235_v59 = vld [vmem:[%s6106_s3 + $0x140] sm:$0xff]  ;;  %v4365_v60 = vpack.c.bf16 %v228_v56, %v225_v55  ;;  %v4385_v61 = vpack.c.bf16 %v218_v57, %v215_v53  ;;  %v221_v62 = vld [vmem:[%s6106_s3 + $0xd0] sm:$0xff]  ;;  %v119_v27 = vsub.s32 0, %v5250_v26  ;;  %v5285_v39 = vsub.s32 1, %v5250_v26 }
   0xf   :  { %4003 = vmatmul.mubr.msk.f32.vlgmr.msra.gmra.mrb[0].mxu0 %vm121_vm1, %v110_v32  ;;  %4354 = vmatpush1.bf16.msra.mxu1 %v4353_v33  ;;  %v4367_v63 = vpack.c.bf16 %v235_v59, %v232_v58  ;;  %v231_v1 = vld [vmem:[%s6106_s3 + $0x120] sm:$0xff]  ;;  %v234_v2 = vld [vmem:[%s6106_s3 + $0x138] sm:$0xff]  ;;  %v224_v3 = vld [vmem:[%s6106_s3 + $0xe8] sm:$0xff] }
  0x10   :  { %4377 = vmatpush3.bf16.msra.mxu0 %v4376_v34  ;;  %4356 = vmatprep.subr.bf16.mxu1 %v4355_v36  ;;  %v238_v5 = vld [vmem:[%s6106_s3 + $0x158] sm:$0xff]  ;;  %v241_v6 = vld [vmem:[%s6106_s3 + $0x170] sm:$0xff]  ;;  %v4369_v7 = vpack.c.bf16 %v234_v2, %v231_v1  ;;  %v4388_v8 = vpack.c.bf16 %v224_v3, %v221_v62  ;;  %v227_v10 = vld [vmem:[%s6106_s3 + $0x100] sm:$0xff] }
  0x11   :  { %4378 = vmatprep.subr.bf16.mxu0 %v4999_v0  ;;  %4037 = vmatprep.mubr.msk.f32.mxu0 %vm5000_vm0, %v5001_v4  ;;  %v4371_v9 = vpack.c.bf16 %v241_v6, %v238_v5  ;;  %v230_v11 = vld [vmem:[%s6106_s3 + $0x118] sm:$0xff]  ;;  %v233_v13 = vld [vmem:[%s6106_s3 + $0x130] sm:$0xff]  ;;  %v236_v14 = vld [vmem:[%s6106_s3 + $0x148] sm:$0xff] }
  0x12   :  { %v4391_v12 = vpack.c.bf16 %v230_v11, %v227_v10  ;;  %v4394_v15 = vpack.c.bf16 %v236_v14, %v233_v13  ;;  %v237_v16 = vld [vmem:[%s6106_s3 + $0x150] sm:$0xff]  ;;  %v240_v17 = vld [vmem:[%s6106_s3 + $0x168] sm:$0xff]  ;;  %v239_v18 = vld [vmem:[%s6106_s3 + $0x160] sm:$0xff] }
  0x13   :  { %4358 = vmatpush1.bf16.msra.mxu1 %v4357_v42  ;;  %v4373_v19 = vpack.c.bf16 %v240_v17, %v237_v16  ;;  %v242_v20 = vld [vmem:[%s6106_s3 + $0x178] sm:$0xff]  ;;  %v82_v22 = vld [vmem:[%s6108_s6 + $0x8] sm:$0xff]  ;;  %v5256_v28 = vld [vmem:[%s6109_s7] sm:$0xff] }
  0x14   :  { %4380 = vmatpush3.bf16.msra.mxu0 %v4379_v43  ;;  %4360 = vmatprep.subr.bf16.mxu1 %v4359_v45  ;;  %v4397_v21 = vpack.c.bf16 %v242_v20, %v239_v18  ;;  %v86_v23 = vld [vmem:[%s6108_s6 + $0x28] sm:$0xff]  ;;  %v120_v29 = vrot.slane %v5256_v28, %v119_v27  ;;  %v81_v30 = vld [vmem:[%s6108_s6] sm:$0xff]  ;;  %v84_v36 = vld [vmem:[%s6108_s6 + $0x18] sm:$0xff] }
  0x15   :  { %4381 = vmatprep.subr.bf16.mxu0 %v4999_v0  ;;  %v5246_v24 = vpack.c.bf16 %v86_v23, %v82_v22  ;;  %v85_v31 = vld [vmem:[%s6108_s6 + $0x20] sm:$0xff]  ;;  %v88_v37 = vld [vmem:[%s6108_s6 + $0x38] sm:$0xff]  ;;  %v5290_v40 = vld [vmem:[%s6109_s7 + $0x10] sm:$0xff] }
  0x16   :  { %v5265_v33 = vpack.c.bf16 %v85_v31, %v81_v30  ;;  %v5281_v38 = vpack.c.bf16 %v88_v37, %v84_v36  ;;  %v254_v41 = vrot.slane %v5290_v40, %v5285_v39  ;;  %v83_v42 = vld [vmem:[%s6108_s6 + $0x10] sm:$0xff]  ;;  %v49_v44 = vld [vmem:[%s6110_s4 + $0x80] sm:$0xff]  ;;  %v50_v45 = vld [vmem:[%s6110_s4 + $0x88] sm:$0xff] }
  0x17   :  { %4362 = vmatpush1.bf16.msra.mxu1 %v4361_v51  ;;  %v87_v43 = vld [vmem:[%s6108_s6 + $0x30] sm:$0xff]  ;;  %v33_v53 = vld [vmem:[%s6110_s4] sm:$0xff]  ;;  %v52_v56 = vld [vmem:[%s6110_s4 + $0x98] sm:$0xff] }
  0x18   :  { %4383 = vmatpush3.bf16.msra.mxu0 %v4382_v52  ;;  %4364 = vmatprep.subr.bf16.mxu1 %v4363_v54  ;;  %v5308_v48 = vpack.c.bf16 %v87_v43, %v83_v42  ;;  %v5314_v52 = vpack.c.bf16 %v50_v45, %v49_v44  ;;  %v34_v54 = vld [vmem:[%s6110_s4 + $0x8] sm:$0xff]  ;;  %v51_v55 = vld [vmem:[%s6110_s4 + $0x90] sm:$0xff]  ;;  %v37_v2 = vld [vmem:[%s6110_s4 + $0x20] sm:$0xff]  ;;  %v5002_v45 = vmov 32  }
  0x19   :  { %4384 = vmatprep.subr.bf16.mxu0 %v4999_v0  ;;  %v5332_v57 = vpack.c.bf16 %v34_v54, %v33_v53  ;;  %v5335_v58 = vpack.c.bf16 %v52_v56, %v51_v55  ;;  %v35_v59 = vld [vmem:[%s6110_s4 + $0x10] sm:$0xff]  ;;  %v54_v62 = vld [vmem:[%s6110_s4 + $0xa8] sm:$0xff]  ;;  %v56_v6 = vld [vmem:[%s6110_s4 + $0xb8] sm:$0xff]  ;;  %4885 = vset.pattern.permute.xlu1 %v5002_v45  ;;  %v246_v54 = vrot.slane %v5256_v28, %v5285_v39 }
  0x1a   :  { %v38_v3 = vld [vmem:[%s6110_s4 + $0x28] sm:$0xff]  ;;  %v55_v5 = vld [vmem:[%s6110_s4 + $0xb0] sm:$0xff]  ;;  %v40_v10 = vld [vmem:[%s6110_s4 + $0x38] sm:$0xff]  ;;  %4886 = vset.pattern.permute.xlu0 %v5002_v45 }
  0x1b   :  { %4366 = vmatpush1.bf16.msra.mxu1 %v4365_v60  ;;  %v36_v60 = vld [vmem:[%s6110_s4 + $0x18] sm:$0xff]  ;;  %v57_v11 = vld [vmem:[%s6110_s4 + $0xc0] sm:$0xff]  ;;  %v42_v16 = vld [vmem:[%s6110_s4 + $0x48] sm:$0xff] }
  0x1c   :  { %4386 = vmatpush3.bf16.msra.mxu0 %v4385_v61  ;;  %4368 = vmatprep.subr.bf16.mxu1 %v4367_v63  ;;  %v53_v61 = vld [vmem:[%s6110_s4 + $0xa0] sm:$0xff]  ;;  %v5352_v63 = vpack.c.bf16 %v36_v60, %v35_v59  ;;  %v59_v17 = vld [vmem:[%s6110_s4 + $0xd0] sm:$0xff]  ;;  %v60_v18 = vld [vmem:[%s6110_s4 + $0xd8] sm:$0xff] }
  0x1d   :  { %4387 = vmatprep.subr.bf16.mxu0 %v4999_v0  ;;  %v5355_v1 = vpack.c.bf16 %v54_v62, %v53_v61  ;;  %v5409_v20 = vpack.c.bf16 %v60_v18, %v59_v17  ;;  %v44_v22 = vld [vmem:[%s6110_s4 + $0x58] sm:$0xff]  ;;  %v61_v27 = vld [vmem:[%s6110_s4 + $0xe0] sm:$0xff]  ;;  %v63_v36 = vld [vmem:[%s6110_s4 + $0xf0] sm:$0xff] }
  0x1e   :  { %v45_v31 = vld [vmem:[%s6110_s4 + $0x60] sm:$0xff]  ;;  %v64_v37 = vld [vmem:[%s6110_s4 + $0xf8] sm:$0xff]  ;;  %v47_v42 = vld [vmem:[%s6110_s4 + $0x70] sm:$0xff] }
  0x1f   :  { %4370 = vmatpush1.bf16.msra.mxu1 %v4369_v7  ;;  %v5370_v7 = vpack.c.bf16 %v38_v3, %v37_v2  ;;  %v48_v43 = vld [vmem:[%s6110_s4 + $0x78] sm:$0xff] }
  0x20   :  { %4389 = vmatpush3.bf16.msra.mxu0 %v4388_v8  ;;  %4372 = vmatprep.subr.bf16.mxu1 %v4371_v9  ;;  %v5373_v8 = vpack.c.bf16 %v56_v6, %v55_v5  ;;  %v39_v9 = vld [vmem:[%s6110_s4 + $0x30] sm:$0xff]  ;;  %v5454_v44 = vpack.c.bf16 %v48_v43, %v47_v42  ;;  %v32_v59 = vld [vmem:[%s6109_s7 + $0x18] sm:$0xff]  ;;  %v93_v42 = vadd.s32 8, %v5250_v26  ;;  %v96_v43 = vmul.u32 8, %v5250_v26 }
  0x21   :  { %4390 = vmatprep.subr.bf16.mxu0 %v4999_v0  ;;  %v5388_v13 = vpack.c.bf16 %v40_v10, %v39_v9 }
  0x22   :  { %v97_v45 = vmul.u32 8, %v93_v42 }
  0x23   :  { %4374 = vmatpush1.bf16.msra.mxu1 %v4373_v19 }
  0x24   :  { %4392 = vmatpush3.bf16.msra.mxu0 %v4391_v12  ;;  %4400 = vmatprep.subr.bf16.mxu1 %v5246_v24  ;;  %v58_v12 = vld [vmem:[%s6110_s4 + $0xc8] sm:$0xff] }
  0x25   :  { %4393 = vmatprep.subr.bf16.mxu0 %v4999_v0  ;;  %v5391_v14 = vpack.c.bf16 %v58_v12, %v57_v11 }
  0x28   :  { %4395 = vmatpush3.bf16.msra.mxu0 %v4394_v15  ;;  %v41_v15 = vld [vmem:[%s6110_s4 + $0x40] sm:$0xff] }
  0x29   :  { %4396 = vmatprep.subr.bf16.mxu0 %v4999_v0  ;;  %v5406_v19 = vpack.c.bf16 %v42_v16, %v41_v15 }
  0x2c   :  { %4398 = vmatpush3.bf16.msra.mxu0 %v4397_v21  ;;  %v43_v21 = vld [vmem:[%s6110_s4 + $0x50] sm:$0xff] }
  0x2d   :  { %4439 = vmatprep.subr.bf16.mxu0 %v4999_v0  ;;  %v5418_v23 = vpack.c.bf16 %v44_v22, %v43_v21 }
  0xe2   :  { %v191_v32 = vpop.f32.mrb[0].mxu0 }
  0xe3   :  { %v5267_v34 = vadd.f32 %v191_v32, %v120_v29  ;;  %v4004_v35 = vpop.f32.mrb[1].mxu0  ;;  %v62_v29 = vld [vmem:[%s6110_s4 + $0xe8] sm:$0xff] }
  0xe4   :  { %v5428_v30 = vpack.c.bf16 %v62_v29, %v61_v27  ;;  %v46_v32 = vld [vmem:[%s6110_s4 + $0x68] sm:$0xff] }
  0xe5   :  { %320 = vmatmul.mubr.f32.vlgmr.msra.gmra.mrb[0].mxu1 %v5267_v34  ;;  %4038 = vmatmul.mubr.f32.vlgmr.msra.gmra.mrb[2].mxu0 %v5267_v34  ;;  %v5436_v35 = vpack.c.bf16 %v46_v32, %v45_v31 }
  0xe6   :  { %4402 = vmatpush1.bf16.msra.mxu1 %v5265_v33  ;;  %480 = vmatprep.mubr.f32.mxu1 %v5001_v4 }
  0xe7   :  { %4044 = vmatprep.mubr.msk.f32.mxu0 %vm5000_vm0, %v5001_v4  ;;  %4404 = vmatprep.subr.bf16.mxu1 %v5281_v38 }
 0x1b8   :  { %v5306_v46 = vpop.f32.mrb[0].mxu1  ;;  %v392_v47 = vpop.f32.mrb[2].mxu0 }
 0x1b9   :  { %v5310_v49 = vadd.f32 %v392_v47, %v254_v41  ;;  %v5312_v50 = vpop.f32.mrb[1].mxu1  ;;  %v4039_v51 = vpop.f32.mrb[3].mxu0  ;;  %v5446_v41 = vpack.c.bf16 %v64_v37, %v63_v36  ;;  %v5460_v47 = vsub.s32 2, %v5250_v26  ;;  %v5479_v61 = vadd.f32 %v5306_v46, %v246_v54 }
 0x1ba   :  { %v30_v51 = vld [vmem:[%s6109_s7 + $0x8] sm:$0xff]  ;;  %v100_v54 = vadd.s32 8, %v96_v43 }
 0x1bb   :  { %3531 = vmatmul.mubr.msk.f32.vlgmr.msra.gmra.mrb[2].mxu1 %vm412_vm2, %v5310_v49  ;;  %v5467_v53 = vrot.slane %v5256_v28, %v5460_v47  ;;  %v250_v55 = vrot.slane %v30_v51, %v5285_v39  ;;  %v5473_v56 = vrot.slane %v30_v51, %v5460_v47  ;;  %v5483_v3 = vrot.slane %v32_v59, %v5460_v47 }
 0x1bc   :  { %4406 = vmatpush1.bf16.msra.mxu1 %v5308_v48  ;;  %551 = vmatprep.mubr.f32.mxu1 %v5001_v4  ;;  %v95_v51 = vand.u32 127, %v91_v25 }
 0x1bd   :  { %4408 = vmatprep.subr.bf16.mxu1 %v5314_v52  ;;  %v5486_v28 = vadd.f32 %v5312_v50, %v250_v55  ;;  %v101_v55 = vadd.s32 8, %v97_v45 }
 0x1be   :  { %vm98_vm4 = vcmp.ge.s32.totalorder %v95_v51, %v96_v43  ;;  %vm99_vm5 = vcmp.ge.s32.totalorder %v95_v51, %v97_v45  ;;  %vm102_vm6 = vcmp.lt.s32.totalorder %v95_v51, %v100_v54  ;;  %v79_v43 = vld [vmem:[%s6111_s5 + $0x70] sm:$0xff]  ;;  %v80_v45 = vld [vmem:[%s6111_s5 + $0x78] sm:$0xff] }
 0x1bf   :  { %3532 = vmatmul.mubr.msk.f32.vlgmr.msra.gmra.mrb[4].mxu1 %vm412_vm2, %v5310_v49  ;;  %vm103_vm7 = vcmp.lt.s32.totalorder %v95_v51, %v101_v55  ;;  %vm104_vm8 = vmand %vm98_vm4, %vm102_vm6  ;;  %v5592_v51 = vpack.c.bf16 %v80_v45, %v79_v43 }
 0x1c0   :  { %4410 = vmatpush3.bf16.msra.mxu1 %v5332_v57  ;;  %vm105_vm9 = vmand %vm99_vm5, %vm103_vm7 }
 0x1c1   :  { %4412 = vmatprep.subr.bf16.mxu1 %v5335_v58  ;;  %vm5502_vm10 = vmpackc.low %vm105_vm9, %vm104_vm8 }
 0x1c4   :  { %4414 = vmatpush3.bf16.msra.mxu1 %v5352_v63 }
 0x1c5   :  { %4416 = vmatprep.subr.bf16.mxu1 %v5355_v1 }
 0x1c8   :  { %4418 = vmatpush3.bf16.msra.mxu1 %v5370_v7 }
 0x1c9   :  { %4420 = vmatprep.subr.bf16.mxu1 %v5373_v8 }
 0x1cc   :  { %4422 = vmatpush3.bf16.msra.mxu1 %v5388_v13 }
 0x1cd   :  { %4424 = vmatprep.subr.bf16.mxu1 %v5391_v14 }
 0x1d0   :  { %4426 = vmatpush3.bf16.msra.mxu1 %v5406_v19 }
 0x1d1   :  { %4428 = vmatprep.subr.bf16.mxu1 %v5409_v20 }
 0x1d4   :  { %4430 = vmatpush3.bf16.msra.mxu1 %v5418_v23 }
 0x1d5   :  { %4432 = vmatprep.subr.bf16.mxu1 %v5428_v30 }
 0x1d8   :  { %4434 = vmatpush3.bf16.msra.mxu1 %v5436_v35 }
 0x1d9   :  { %4436 = vmatprep.subr.bf16.mxu1 %v5446_v41 }
 0x1dc   :  { %4438 = vmatpush3.bf16.msra.mxu1 %v5454_v44 }
 0x1dd   :  { %4467 = vmatprep.subr.bf16.mxu1 %v5246_v24 }
 0x28e   :  { %v482_v60 = vpop.f32.mrb[2].mxu1 }
 0x28f   :  { %v483_v62 = vadd.f32 %v482_v60, %v5467_v53  ;;  %v484_v2 = vpop.f32.mrb[3].mxu1  ;;  %v6114_v60 = vmov 1.0|1.0  }
 0x290   :  { %v485_v39 = vadd.f32 %v484_v2, %v5473_v56  ;;  %4441 = vmatpush3.bf16.msk.msra.mxu0 %vm5502_vm10, %v6114_v60  ;;  %v66_v2 = vld [vmem:[%s6111_s5 + $0x8] sm:$0xff] }
 0x291   :  { %v564_v5 = vadd.f32 %v483_v62, %v5479_v61  ;;  %4442 = vmatprep.subr.bf16.mxu0 %v4999_v0  ;;  %v65_v62 = vld [vmem:[%s6111_s5] sm:$0xff] }
 0x292   :  { %v565_v6 = vadd.f32 %v485_v39, %v5486_v28  ;;  %v5491_v9 = vpop.f32.mrb[4].mxu1 }
 0x293   :  { %v555_v10 = vpop.f32.mrb[5].mxu1  ;;  %v566_v12 = vmax.f32 %v564_v5, 0.0  ;;  %v5516_v5 = vpack.c.bf16 %v66_v2, %v65_v62  ;;  %v5615_v62 = vrot.slane %v5290_v40, %v5460_v47 }
 0x294   :  { %v567_v46 = vmax.f32 %v565_v6, 0.0  ;;  %v556_v11 = vadd.f32 %v555_v10, %v5483_v3  ;;  %v67_v10 = vld [vmem:[%s6111_s5 + $0x10] sm:$0xff] }
 0x295   :  { %v554_v2 = vadd.f32 %v5491_v9, %v5615_v62 }
 0x296   :  { %v3533_v15 = vmul.f32 -1.442695, %v556_v11  ;;  %632 = vmatprep.mubr.f32.mxu1 %v567_v46  ;;  %v68_v46 = vld [vmem:[%s6111_s5 + $0x18] sm:$0xff] }
 0x297   :  { %633 = vmatmul.mubr.f32.vlgmr.msra.gmra.mrb[6].mxu1 %v566_v12  ;;  %v5529_v11 = vpack.c.bf16 %v68_v46, %v67_v10  ;;  %v69_v12 = vld [vmem:[%s6111_s5 + $0x20] sm:$0xff] }
 0x298   :  { %4887 = vpow2.f32 %v3533_v15  ;;  %4469 = vmatpush1.bf16.msra.mxu1 %v5265_v33  ;;  %902 = vmatprep.mubr.f32.mxu1 %v5001_v4  ;;  %v70_v15 = vld [vmem:[%s6111_s5 + $0x28] sm:$0xff] }
 0x299   :  { %4471 = vmatprep.subr.bf16.mxu1 %v5281_v38 }
 0x2a2   :  { %v4888_v50 = vpop.eup %4887 }
 0x2a3   :  { %v561_v16 = vadd.f32 1.0, %v4888_v50  ;;  %v5541_v50 = vpack.c.bf16 %v70_v15, %v69_v12 }
 0x2a5   :  { %4889 = vrcp.f32 %v561_v16  ;;  %v71_v16 = vld [vmem:[%s6111_s5 + $0x30] sm:$0xff] }
 0x2af   :  { %v4890_v17 = vpop.eup %4889 }
 0x2b0   :  { %796 = vperm.xlu1 %4885, %v4890_v17   ;;  %v72_v17 = vld [vmem:[%s6111_s5 + $0x38] sm:$0xff] }
 0x32f   :  { %v797_v10 = vpop.permute.xlu1 %796 }
 0x36a   :  { %v3637_v18 = vpop.f32.mrb[6].mxu1 }
 0x36b   :  { %v3638_v21 = vpop.f32.mrb[7].mxu1 }
 0x36c   :  { %v3639_v22 = vadd.f32 %v3638_v21, %v3637_v18  ;;  %v5551_v18 = vpack.c.bf16 %v72_v17, %v71_v16  ;;  %v73_v21 = vld [vmem:[%s6111_s5 + $0x40] sm:$0xff] }
 0x36e   :  { %v639_v27 = vsel %vm638_vm3, %v3639_v22, -inf }
 0x36f   :  { %640 = vmax.xlane.f32.xlu0 %v639_v27 }
 0x3fc   :  { %v641_v29 = vpop.xlane.xlu0 %640 }
 0x3fd   :  { %v642_v31 = vsub.f32 %v3639_v22, %v641_v29  ;;  %v74_v22 = vld [vmem:[%s6111_s5 + $0x48] sm:$0xff]  ;;  %v75_v29 = vld [vmem:[%s6111_s5 + $0x50] sm:$0xff] }
 0x3fe   :  { %v5561_v27 = vpack.c.bf16 %v74_v22, %v73_v21 }
 0x3ff   :  { %v643_v32 = vmul.f32 1.442695, %v642_v31  ;;  %v76_v31 = vld [vmem:[%s6111_s5 + $0x58] sm:$0xff] }
 0x401   :  { %4891 = vpow2.f32 %v643_v32  ;;  %v5571_v32 = vpack.c.bf16 %v76_v31, %v75_v29 }
 0x40b   :  { %v4892_v36 = vpop.eup %4891 }
 0x40c   :  { %v645_v37 = vsel %vm638_vm3, %v4892_v36, 0.0 }
 0x40d   :  { %646 = vadd.xlane.f32.xlu0 %v645_v37  ;;  %v78_v37 = vld [vmem:[%s6111_s5 + $0x68] sm:$0xff] }
 0x49a   :  { %v647_v25 = vpop.xlane.xlu0 %646 }
 0x49b   :  { %4893 = vrcp.f32 %v647_v25 }
 0x4a5   :  { %v4894_v39 = vpop.eup %4893 }
 0x4a6   :  { %v5518_v6 = vmul.f32 %v4894_v39, %v4892_v36  ;;  %v77_v36 = vld [vmem:[%s6111_s5 + $0x60] sm:$0xff] }
 0x4a7   :  { %v5581_v42 = vpack.c.bf16 %v78_v37, %v77_v36  ;;  %v5622_v39 = vld [vmem:[%s6112_s1] sm:$0xff] }
 0x4a8   :  { %4045 = vmatmul.mubr.msk.f32.vlgmr.msra.gmra.mrb[4].mxu0 %vm412_vm2, %v5518_v6  ;;  %v800_v12 = vadd.f32 %v554_v2, %v5622_v39 }
 0x4a9   :  { %4444 = vmatpush3.bf16.msra.mxu0 %v5516_v5  ;;  %4079 = vmatprep.mubr.msk.f32.mxu0 %vm5000_vm0, %v5001_v4 }
 0x4aa   :  { %4445 = vmatprep.subr.bf16.mxu0 %v4999_v0 }
 0x4ad   :  { %4447 = vmatpush3.bf16.msra.mxu0 %v5529_v11 }
 0x4ae   :  { %4448 = vmatprep.subr.bf16.mxu0 %v4999_v0 }
 0x4b1   :  { %4450 = vmatpush3.bf16.msra.mxu0 %v5541_v50 }
 0x4b2   :  { %4451 = vmatprep.subr.bf16.mxu0 %v4999_v0 }
 0x4b5   :  { %4453 = vmatpush3.bf16.msra.mxu0 %v5551_v18 }
 0x4b6   :  { %4454 = vmatprep.subr.bf16.mxu0 %v4999_v0 }
 0x4b9   :  { %4456 = vmatpush3.bf16.msra.mxu0 %v5561_v27 }
 0x4ba   :  { %4457 = vmatprep.subr.bf16.mxu0 %v4999_v0 }
 0x4bd   :  { %4459 = vmatpush3.bf16.msra.mxu0 %v5571_v32 }
 0x4be   :  { %4460 = vmatprep.subr.bf16.mxu0 %v4999_v0 }
 0x4c1   :  { %4462 = vmatpush3.bf16.msra.mxu0 %v5581_v42 }
 0x4c2   :  { %4463 = vmatprep.subr.bf16.mxu0 %v4999_v0 }
 0x4c5   :  { %4465 = vmatpush3.bf16.msra.mxu0 %v5592_v51 }
 0x4c6   :  { %4475 = vmatprep.subr.bf16.mxu0 %v5314_v52 }
 0x57b   :  { %v719_v54 = vpop.f32.mrb[4].mxu0 }
 0x57c   :  { %v723_v55 = vmul.f32 %v719_v54, %v5267_v34  ;;  %v4046_v25 = vpop.f32.mrb[5].mxu0  ;;  %v5007_v54 = vmov 1983009808  }
 0x57e   :  { %4080 = vmatmul.mubr.f32.vlgmr.msra.gmra.mrb[6].mxu0 %v723_v55  ;;  %v828_v55 = vunpack.c.l.s4 %v5007_v54 }
 0x57f   :  { %4477 = vmatpush3.bf16.msra.mxu0 %v5332_v57 }
 0x580   :  { %4479 = vmatprep.subr.bf16.mxu0 %v5335_v58  ;;  %v829_v25 = vunpack.c.0.s8 %v828_v55 }
 0x582   :  { %v5633_v2 = vsub.s32 %v829_v25, %v5250_v26 }
 0x583   :  { %4481 = vmatpush3.bf16.msra.mxu0 %v5352_v63 }
 0x584   :  { %4483 = vmatprep.subr.bf16.mxu0 %v5355_v1 }
 0x587   :  { %4485 = vmatpush3.bf16.msra.mxu0 %v5370_v7 }
 0x588   :  { %4487 = vmatprep.subr.bf16.mxu0 %v5373_v8 }
 0x58b   :  { %4489 = vmatpush3.bf16.msra.mxu0 %v5388_v13 }
 0x58c   :  { %4491 = vmatprep.subr.bf16.mxu0 %v5391_v14 }
 0x58f   :  { %4493 = vmatpush3.bf16.msra.mxu0 %v5406_v19 }
 0x590   :  { %4495 = vmatprep.subr.bf16.mxu0 %v5409_v20 }
 0x593   :  { %4497 = vmatpush3.bf16.msra.mxu0 %v5418_v23 }
 0x594   :  { %4499 = vmatprep.subr.bf16.mxu0 %v5428_v30 }
 0x597   :  { %4501 = vmatpush3.bf16.msra.mxu0 %v5436_v35 }
 0x598   :  { %4503 = vmatprep.subr.bf16.mxu0 %v5446_v41 }
 0x59b   :  { %4505 = vmatpush3.bf16.msra.mxu0 %v5454_v44 }
 0x59c   :  { %4534 = vmatprep.subr.bf16.mxu0 %v5246_v24 }
 0x651   :  { %v790_v46 = vpop.f32.mrb[6].mxu0 }
 0x652   :  { %v799_v15 = vmul.f32 %v797_v10, %v790_v46  ;;  %v4081_v16 = vpop.f32.mrb[7].mxu0 }
 0x654   :  { %v801_v17 = vadd.f32 %v800_v12, %v799_v15 }
 0x656   :  { %4895 = vtanh.f32 %v801_v17  ;;  %v3537_v40 = vmul.f32 -1.442695, %v801_v17 }
 0x658   :  { %4897 = vpow2.f32 %v3537_v40 }
 0x660   :  { %v4896_v21 = vpop.eup %4895 }
 0x661   :  { %811 = vrot.lane.b32.xlu1 %v4896_v21, %s5004_s10 }
 0x662   :  { %v4898_v47 = vpop.eup %4897 }
 0x663   :  { %v805_v9 = vadd.f32 1.0, %v4898_v47 }
 0x665   :  { %4899 = vrcp.f32 %v805_v9 }
 0x66f   :  { %v4900_v22 = vpop.eup %4899 }
 0x670   :  { %v809_v36 = vmul.f32 %v4900_v22, %v5310_v49 }
 0x6d3   :  { %v812_v29 = vpop.permute.xlu1 %811 }
 0x6d4   :  { %v814_v31 = vmul.f32 %v4900_v22, %v812_v29 }
 0x6d6   :  { %816 = vrot.lane.b32.xlu0 %v814_v31, %s5005_s2 }
 0x748   :  { %v817_v37 = vpop.permute.xlu0 %816 }
 0x749   :  { %v5628_v43 = vadd.f32 %v817_v37, %v809_v36 }
 0x74b   :  { %4901 = vtanh.f32 %v5628_v43 }
 0x755   :  { %v4902_v45 = vpop.eup %4901 }
 0x756   :  { %822 = vrot.lane.b32.xlu1 %v4902_v45, %s5006_s0 }
 0x7c8   :  { %v823_v10 = vpop.permute.xlu1 %822 }
 0x7c9   :  { %v825_v46 = vmul.f32 %v4900_v22, %v823_v10 }
 0x7cb   :  { %v833_v12 = vrot.slane %v825_v46, %v5633_v2 }
 0x7cd   :  { %834 = vrot.lane.b32.xlu1 %v833_v12, %s5008_s11 }
 0x83f   :  { %v835_v49 = vpop.permute.xlu1 %834 }
 0x840   :  { %3538 = vmatmul.mubr.msk.f32.vlgmr.msra.gmra.mrb[8].mxu1 %vm412_vm2, %v835_v49 }
 0x841   :  { %4473 = vmatpush1.bf16.msra.mxu1 %v5308_v48  ;;  %973 = vmatprep.mubr.f32.mxu1 %v5001_v4 }
 0x842   :  { %4506 = vmatprep.subr.bf16.mxu1 %v4999_v0 }
 0x844   :  { %3539 = vmatmul.mubr.msk.f32.vlgmr.msra.gmra.mrb[10].mxu1 %vm412_vm2, %v835_v49 }
 0x845   :  { %4508 = vmatpush3.bf16.msk.msra.mxu1 %vm5502_vm10, %v6114_v60  ;;  %4086 = vmatprep.mubr.msk.f32.mxu1 %vm5000_vm0, %v5001_v4 }
 0x846   :  { %4509 = vmatprep.subr.bf16.mxu1 %v4999_v0 }
 0x913   :  { %v904_v26 = vpop.f32.mrb[8].mxu1 }
 0x914   :  { %v905_v15 = vadd.f32 %v904_v26, %v5467_v53  ;;  %v906_v16 = vpop.f32.mrb[9].mxu1 }
 0x915   :  { %v907_v17 = vadd.f32 %v906_v16, %v5473_v56 }
 0x916   :  { %v986_v21 = vadd.f32 %v905_v15, %v5479_v61 }
 0x917   :  { %v987_v40 = vadd.f32 %v907_v17, %v5486_v28  ;;  %v5652_v47 = vpop.f32.mrb[10].mxu1 }
 0x918   :  { %v977_v9 = vpop.f32.mrb[11].mxu1  ;;  %v988_v29 = vmax.f32 %v986_v21, 0.0 }
 0x919   :  { %v989_v22 = vmax.f32 %v987_v40, 0.0  ;;  %v5658_v31 = vadd.f32 %v977_v9, %v5483_v3 }
 0x91b   :  { %1054 = vmatprep.mubr.f32.mxu0 %v989_v22  ;;  %v3540_v36 = vmul.f32 -1.442695, %v5658_v31 }
 0x91c   :  { %1055 = vmatmul.mubr.f32.vlgmr.msra.gmra.mrb[8].mxu0 %v988_v29 }
 0x91d   :  { %4536 = vmatpush1.bf16.msra.mxu0 %v5265_v33  ;;  %1326 = vmatprep.mubr.f32.mxu0 %v5001_v4  ;;  %4903 = vpow2.f32 %v3540_v36  ;;  %v976_v36 = vadd.f32 %v5652_v47, %v5615_v62 }
 0x91e   :  { %4538 = vmatprep.subr.bf16.mxu0 %v5281_v38 }
 0x927   :  { %v4904_v55 = vpop.eup %4903 }
 0x928   :  { %v983_v10 = vadd.f32 1.0, %v4904_v55 }
 0x92a   :  { %4905 = vrcp.f32 %v983_v10 }
 0x934   :  { %v4906_v46 = vpop.eup %4905 }
 0x9ef   :  { %v3692_v37 = vpop.f32.mrb[8].mxu0 }
 0x9f0   :  { %v3693_v45 = vpop.f32.mrb[9].mxu0 }
 0x9f1   :  { %v3694_v54 = vadd.f32 %v3693_v45, %v3692_v37  ;;  %v1222_v37 = vrot.slane %v5622_v39, 2 }
 0x9f3   :  { %v1060_v25 = vsel %vm638_vm3, %v3694_v54, -inf  ;;  %v1224_v55 = vadd.f32 %v1222_v37, %v976_v36 }
 0x9f4   :  { %1061 = vmax.xlane.f32.xlu1 %v1060_v25 }
 0xa05   :  { %1217 = vperm.xlu1 %4885, %v4906_v46  }
 0xa81   :  { %v1062_v12 = vpop.xlane.xlu1 %1061 }
 0xa82   :  { %v1063_v49 = vsub.f32 %v3694_v54, %v1062_v12 }
 0xa84   :  { %v1064_v26 = vmul.f32 1.442695, %v1063_v49 }
 0xa85   :  { %v1218_v45 = vpop.permute.xlu1 %1217 }
 0xa86   :  { %4907 = vpow2.f32 %v1064_v26 }
 0xa90   :  { %v4908_v15 = vpop.eup %4907 }
 0xa91   :  { %v1066_v16 = vsel %vm638_vm3, %v4908_v15, 0.0 }
 0xa92   :  { %1067 = vadd.xlane.f32.xlu0 %v1066_v16 }
 0xb1f   :  { %v1068_v17 = vpop.xlane.xlu0 %1067 }
 0xb20   :  { %4909 = vrcp.f32 %v1068_v17 }
 0xb2a   :  { %v4910_v21 = vpop.eup %4909 }
 0xb2b   :  { %v5663_v40 = vmul.f32 %v4910_v21, %v4908_v15 }
 0xb2d   :  { %4087 = vmatmul.mubr.msk.f32.vlgmr.msra.gmra.mrb[12].mxu1 %vm412_vm2, %v5663_v40 }
 0xb2e   :  { %4511 = vmatpush3.bf16.msra.mxu1 %v5516_v5  ;;  %4121 = vmatprep.mubr.msk.f32.mxu1 %vm5000_vm0, %v5001_v4 }
 0xb2f   :  { %4512 = vmatprep.subr.bf16.mxu1 %v4999_v0 }
 0xb32   :  { %4514 = vmatpush3.bf16.msra.mxu1 %v5529_v11 }
 0xb33   :  { %4515 = vmatprep.subr.bf16.mxu1 %v4999_v0 }
 0xb36   :  { %4517 = vmatpush3.bf16.msra.mxu1 %v5541_v50 }
 0xb37   :  { %4518 = vmatprep.subr.bf16.mxu1 %v4999_v0 }
 0xb3a   :  { %4520 = vmatpush3.bf16.msra.mxu1 %v5551_v18 }
 0xb3b   :  { %4521 = vmatprep.subr.bf16.mxu1 %v4999_v0 }
 0xb3e   :  { %4523 = vmatpush3.bf16.msra.mxu1 %v5561_v27 }
 0xb3f   :  { %4524 = vmatprep.subr.bf16.mxu1 %v4999_v0 }
 0xb42   :  { %4526 = vmatpush3.bf16.msra.mxu1 %v5571_v32 }
 0xb43   :  { %4527 = vmatprep.subr.bf16.mxu1 %v4999_v0 }
 0xb46   :  { %4529 = vmatpush3.bf16.msra.mxu1 %v5581_v42 }
 0xb47   :  { %4530 = vmatprep.subr.bf16.mxu1 %v4999_v0 }
 0xb4a   :  { %4532 = vmatpush3.bf16.msra.mxu1 %v5592_v51 }
 0xb4b   :  { %4542 = vmatprep.subr.bf16.mxu1 %v5314_v52 }
 0xc00   :  { %v1140_v9 = vpop.f32.mrb[12].mxu1 }
 0xc01   :  { %v1144_v22 = vmul.f32 %v1140_v9, %v5267_v34  ;;  %v4088_v29 = vpop.f32.mrb[13].mxu1 }
 0xc03   :  { %4122 = vmatmul.mubr.f32.vlgmr.msra.gmra.mrb[14].mxu1 %v1144_v22 }
 0xc04   :  { %4544 = vmatpush3.bf16.msra.mxu1 %v5332_v57 }
 0xc05   :  { %4546 = vmatprep.subr.bf16.mxu1 %v5335_v58 }
 0xc08   :  { %4548 = vmatpush3.bf16.msra.mxu1 %v5352_v63 }
 0xc09   :  { %4550 = vmatprep.subr.bf16.mxu1 %v5355_v1 }
 0xc0c   :  { %4552 = vmatpush3.bf16.msra.mxu1 %v5370_v7 }
 0xc0d   :  { %4554 = vmatprep.subr.bf16.mxu1 %v5373_v8 }
 0xc10   :  { %4556 = vmatpush3.bf16.msra.mxu1 %v5388_v13 }
 0xc11   :  { %4558 = vmatprep.subr.bf16.mxu1 %v5391_v14 }
 0xc14   :  { %4560 = vmatpush3.bf16.msra.mxu1 %v5406_v19 }
 0xc15   :  { %4562 = vmatprep.subr.bf16.mxu1 %v5409_v20 }
 0xc18   :  { %4564 = vmatpush3.bf16.msra.mxu1 %v5418_v23 }
 0xc19   :  { %4566 = vmatprep.subr.bf16.mxu1 %v5428_v30 }
 0xc1c   :  { %4568 = vmatpush3.bf16.msra.mxu1 %v5436_v35 }
 0xc1d   :  { %4570 = vmatprep.subr.bf16.mxu1 %v5446_v41 }
 0xc20   :  { %4572 = vmatpush3.bf16.msra.mxu1 %v5454_v44 }
 0xc21   :  { %4601 = vmatprep.subr.bf16.mxu1 %v5246_v24 }
 0xcd6   :  { %v1211_v54 = vpop.f32.mrb[14].mxu1 }
 0xcd7   :  { %v1220_v25 = vmul.f32 %v1218_v45, %v1211_v54  ;;  %v4123_v10 = vpop.f32.mrb[15].mxu1 }
 0xcd9   :  { %v1225_v46 = vadd.f32 %v1224_v55, %v1220_v25 }
 0xcdb   :  { %4911 = vtanh.f32 %v1225_v46  ;;  %v3544_v49 = vmul.f32 -1.442695, %v1225_v46 }
 0xcdd   :  { %4913 = vpow2.f32 %v3544_v49 }
 0xce5   :  { %v4912_v12 = vpop.eup %4911 }
 0xce6   :  { %1235 = vrot.lane.b32.xlu0 %v4912_v12, %s5004_s10 }
 0xce7   :  { %v4914_v26 = vpop.eup %4913 }
 0xce8   :  { %v1229_v15 = vadd.f32 1.0, %v4914_v26 }
 0xcea   :  { %4915 = vrcp.f32 %v1229_v15 }
 0xcf4   :  { %v4916_v16 = vpop.eup %4915 }
 0xcf5   :  { %v1233_v21 = vmul.f32 %v4916_v16, %v5628_v43 }
 0xd58   :  { %v1236_v17 = vpop.permute.xlu0 %1235 }
 0xd59   :  { %v1238_v47 = vmul.f32 %v4916_v16, %v1236_v17 }
 0xd5b   :  { %1240 = vrot.lane.b32.xlu1 %v1238_v47, %s5005_s2 }
 0xdcd   :  { %v1241_v9 = vpop.permute.xlu1 %1240 }
 0xdce   :  { %v5708_v22 = vadd.f32 %v1241_v9, %v1233_v21 }
 0xdd0   :  { %4917 = vtanh.f32 %v5708_v22 }
 0xdda   :  { %v4918_v29 = vpop.eup %4917 }
 0xddb   :  { %1246 = vrot.lane.b32.xlu1 %v4918_v29, %s5006_s0 }
 0xe4d   :  { %v1247_v36 = vpop.permute.xlu1 %1246 }
 0xe4e   :  { %v1249_v37 = vmul.f32 %v4916_v16, %v1247_v36 }
 0xe50   :  { %v1257_v45 = vrot.slane %v1249_v37, %v5633_v2 }
 0xe52   :  { %1258 = vrot.lane.b32.xlu1 %v1257_v45, %s5008_s11 }
 0xec4   :  { %v1259_v54 = vpop.permute.xlu1 %1258 }
 0xec5   :  { %3545 = vmatmul.mubr.msk.f32.vlgmr.msra.gmra.mrb[10].mxu0 %vm412_vm2, %v1259_v54 }
 0xec6   :  { %4540 = vmatpush1.bf16.msra.mxu0 %v5308_v48  ;;  %1397 = vmatprep.mubr.f32.mxu0 %v5001_v4 }
 0xec7   :  { %4573 = vmatprep.subr.bf16.mxu0 %v4999_v0 }
 0xec9   :  { %3546 = vmatmul.mubr.msk.f32.vlgmr.msra.gmra.mrb[12].mxu0 %vm412_vm2, %v1259_v54 }
 0xeca   :  { %4575 = vmatpush3.bf16.msk.msra.mxu0 %vm5502_vm10, %v6114_v60  ;;  %4128 = vmatprep.mubr.msk.f32.mxu0 %vm5000_vm0, %v5001_v4 }
 0xecb   :  { %4576 = vmatprep.subr.bf16.mxu0 %v4999_v0 }
 0xf98   :  { %v1328_v43 = vpop.f32.mrb[10].mxu0 }
 0xf99   :  { %v1329_v55 = vadd.f32 %v1328_v43, %v5467_v53  ;;  %v1330_v25 = vpop.f32.mrb[11].mxu0 }
 0xf9a   :  { %v1331_v10 = vadd.f32 %v1330_v25, %v5473_v56 }
 0xf9b   :  { %v1410_v46 = vadd.f32 %v1329_v55, %v5479_v61 }
 0xf9c   :  { %v1411_v12 = vadd.f32 %v1331_v10, %v5486_v28  ;;  %v5729_v49 = vpop.f32.mrb[12].mxu0 }
 0xf9d   :  { %v1401_v26 = vpop.f32.mrb[13].mxu0  ;;  %v1412_v16 = vmax.f32 %v1410_v46, 0.0 }
 0xf9e   :  { %v1413_v15 = vmax.f32 %v1411_v12, 0.0  ;;  %v5736_v37 = vadd.f32 %v1401_v26, %v5483_v3 }
 0xfa0   :  { %1478 = vmatprep.mubr.f32.mxu1 %v1413_v15  ;;  %v3547_v54 = vmul.f32 -1.442695, %v5736_v37 }
 0xfa1   :  { %1479 = vmatmul.mubr.f32.vlgmr.msra.gmra.mrb[16].mxu1 %v1412_v16 }
 0xfa2   :  { %4603 = vmatpush1.bf16.msra.mxu1 %v5265_v33  ;;  %1749 = vmatprep.mubr.f32.mxu1 %v5001_v4 }
 0xfa3   :  { %4605 = vmatprep.subr.bf16.mxu1 %v5281_v38 }
0x1074   :  { %v3747_v17 = vpop.f32.mrb[16].mxu1 }
0x1075   :  { %v3748_v47 = vpop.f32.mrb[17].mxu1 }
0x1076   :  { %v3749_v21 = vadd.f32 %v3748_v47, %v3747_v17 }
0x1078   :  { %v1484_v9 = vsel %vm638_vm3, %v3749_v21, -inf }
0x1079   :  { %1485 = vmax.xlane.f32.xlu1 %v1484_v9  ;;  %v1645_v9 = vrot.slane %v5622_v39, 4 }
0x1106   :  { %v1486_v29 = vpop.xlane.xlu1 %1485 }
0x1107   :  { %v1487_v36 = vsub.f32 %v3749_v21, %v1486_v29  ;;  %v1400_v21 = vadd.f32 %v5729_v49, %v5615_v62 }
0x1109   :  { %v1488_v45 = vmul.f32 1.442695, %v1487_v36 }
0x110b   :  { %4919 = vpow2.f32 %v1488_v45  ;;  %v1647_v45 = vadd.f32 %v1645_v9, %v1400_v21 }
0x110c   :  { %4921 = vpow2.f32 %v3547_v54 }
0x1115   :  { %v4920_v43 = vpop.eup %4919 }
0x1116   :  { %v1490_v55 = vsel %vm638_vm3, %v4920_v43, 0.0  ;;  %v4922_v25 = vpop.eup %4921 }
0x1117   :  { %1491 = vadd.xlane.f32.xlu0 %v1490_v55  ;;  %v1407_v10 = vadd.f32 1.0, %v4922_v25 }
0x1119   :  { %4923 = vrcp.f32 %v1407_v10 }
0x1123   :  { %v4924_v46 = vpop.eup %4923 }
0x112d   :  { %1641 = vperm.xlu0 %4886, %v4924_v46  }
0x11a4   :  { %v1492_v12 = vpop.xlane.xlu0 %1491 }
0x11a5   :  { %4925 = vrcp.f32 %v1492_v12 }
0x11ac   :  { %v1642_v29 = vpop.permute.xlu0 %1641 }
0x11af   :  { %v4926_v15 = vpop.eup %4925 }
0x11b0   :  { %v5740_v16 = vmul.f32 %v4926_v15, %v4920_v43 }
0x11b2   :  { %4129 = vmatmul.mubr.msk.f32.vlgmr.msra.gmra.mrb[14].mxu0 %vm412_vm2, %v5740_v16 }
0x11b3   :  { %4578 = vmatpush3.bf16.msra.mxu0 %v5516_v5  ;;  %4163 = vmatprep.mubr.msk.f32.mxu0 %vm5000_vm0, %v5001_v4 }
0x11b4   :  { %4579 = vmatprep.subr.bf16.mxu0 %v4999_v0 }
0x11b7   :  { %4581 = vmatpush3.bf16.msra.mxu0 %v5529_v11 }
0x11b8   :  { %4582 = vmatprep.subr.bf16.mxu0 %v4999_v0 }
0x11bb   :  { %4584 = vmatpush3.bf16.msra.mxu0 %v5541_v50 }
0x11bc   :  { %4585 = vmatprep.subr.bf16.mxu0 %v4999_v0 }
0x11bf   :  { %4587 = vmatpush3.bf16.msra.mxu0 %v5551_v18 }
0x11c0   :  { %4588 = vmatprep.subr.bf16.mxu0 %v4999_v0 }
0x11c3   :  { %4590 = vmatpush3.bf16.msra.mxu0 %v5561_v27 }
0x11c4   :  { %4591 = vmatprep.subr.bf16.mxu0 %v4999_v0 }
0x11c7   :  { %4593 = vmatpush3.bf16.msra.mxu0 %v5571_v32 }
0x11c8   :  { %4594 = vmatprep.subr.bf16.mxu0 %v4999_v0 }
0x11cb   :  { %4596 = vmatpush3.bf16.msra.mxu0 %v5581_v42 }
0x11cc   :  { %4597 = vmatprep.subr.bf16.mxu0 %v4999_v0 }
0x11cf   :  { %4599 = vmatpush3.bf16.msra.mxu0 %v5592_v51 }
0x11d0   :  { %4609 = vmatprep.subr.bf16.mxu0 %v5314_v52 }
0x1285   :  { %v1564_v26 = vpop.f32.mrb[14].mxu0 }
0x1286   :  { %v1568_v17 = vmul.f32 %v1564_v26, %v5267_v34  ;;  %v4130_v47 = vpop.f32.mrb[15].mxu0 }
0x1288   :  { %4164 = vmatmul.mubr.f32.vlgmr.msra.gmra.mrb[16].mxu0 %v1568_v17 }
0x1289   :  { %4611 = vmatpush3.bf16.msra.mxu0 %v5332_v57 }
0x128a   :  { %4613 = vmatprep.subr.bf16.mxu0 %v5335_v58 }
0x128d   :  { %4615 = vmatpush3.bf16.msra.mxu0 %v5352_v63 }
0x128e   :  { %4617 = vmatprep.subr.bf16.mxu0 %v5355_v1 }
0x1291   :  { %4619 = vmatpush3.bf16.msra.mxu0 %v5370_v7 }
0x1292   :  { %4621 = vmatprep.subr.bf16.mxu0 %v5373_v8 }
0x1295   :  { %4623 = vmatpush3.bf16.msra.mxu0 %v5388_v13 }
0x1296   :  { %4625 = vmatprep.subr.bf16.mxu0 %v5391_v14 }
0x1299   :  { %4627 = vmatpush3.bf16.msra.mxu0 %v5406_v19 }
0x129a   :  { %4629 = vmatprep.subr.bf16.mxu0 %v5409_v20 }
0x129d   :  { %4631 = vmatpush3.bf16.msra.mxu0 %v5418_v23 }
0x129e   :  { %4633 = vmatprep.subr.bf16.mxu0 %v5428_v30 }
0x12a1   :  { %4635 = vmatpush3.bf16.msra.mxu0 %v5436_v35 }
0x12a2   :  { %4637 = vmatprep.subr.bf16.mxu0 %v5446_v41 }
0x12a5   :  { %4639 = vmatpush3.bf16.msra.mxu0 %v5454_v44 }
0x12a6   :  { %4668 = vmatprep.subr.bf16.mxu0 %v5246_v24 }
0x135b   :  { %v1635_v36 = vpop.f32.mrb[16].mxu0 }
0x135c   :  { %v1644_v54 = vmul.f32 %v1642_v29, %v1635_v36  ;;  %v4165_v43 = vpop.f32.mrb[17].mxu0 }
0x135e   :  { %v1648_v55 = vadd.f32 %v1647_v45, %v1644_v54 }
0x1360   :  { %4927 = vtanh.f32 %v1648_v55  ;;  %v3551_v10 = vmul.f32 -1.442695, %v1648_v55 }
0x1362   :  { %4929 = vpow2.f32 %v3551_v10 }
0x136a   :  { %v4928_v25 = vpop.eup %4927 }
0x136b   :  { %1658 = vrot.lane.b32.xlu1 %v4928_v25, %s5004_s10 }
0x136c   :  { %v4930_v46 = vpop.eup %4929 }
0x136d   :  { %v1652_v12 = vadd.f32 1.0, %v4930_v46 }
0x136f   :  { %4931 = vrcp.f32 %v1652_v12 }
0x1379   :  { %v4932_v15 = vpop.eup %4931 }
0x137a   :  { %v1656_v17 = vmul.f32 %v4932_v15, %v5708_v22 }
0x13dd   :  { %v1659_v26 = vpop.permute.xlu1 %1658 }
0x13de   :  { %v1661_v49 = vmul.f32 %v4932_v15, %v1659_v26 }
0x13e0   :  { %1663 = vrot.lane.b32.xlu1 %v1661_v49, %s5005_s2 }
0x1452   :  { %v1664_v47 = vpop.permute.xlu1 %1663 }
0x1453   :  { %v5785_v21 = vadd.f32 %v1664_v47, %v1656_v17 }
0x1455   :  { %4933 = vtanh.f32 %v5785_v21 }
0x145f   :  { %v4934_v9 = vpop.eup %4933 }
0x1460   :  { %1669 = vrot.lane.b32.xlu1 %v4934_v9, %s5006_s0 }
0x14d2   :  { %v1670_v29 = vpop.permute.xlu1 %1669 }
0x14d3   :  { %v1672_v36 = vmul.f32 %v4932_v15, %v1670_v29 }
0x14d5   :  { %v1680_v45 = vrot.slane %v1672_v36, %v5633_v2 }
0x14d7   :  { %1681 = vrot.lane.b32.xlu1 %v1680_v45, %s5008_s11 }
0x1549   :  { %v1682_v54 = vpop.permute.xlu1 %1681 }
0x154a   :  { %3552 = vmatmul.mubr.msk.f32.vlgmr.msra.gmra.mrb[18].mxu1 %vm412_vm2, %v1682_v54 }
0x154b   :  { %4607 = vmatpush1.bf16.msra.mxu1 %v5308_v48  ;;  %1820 = vmatprep.mubr.f32.mxu1 %v5001_v4 }
0x154c   :  { %4640 = vmatprep.subr.bf16.mxu1 %v4999_v0 }
0x154e   :  { %3553 = vmatmul.mubr.msk.f32.vlgmr.msra.gmra.mrb[20].mxu1 %vm412_vm2, %v1682_v54 }
0x154f   :  { %4642 = vmatpush3.bf16.msk.msra.mxu1 %vm5502_vm10, %v6114_v60  ;;  %4170 = vmatprep.mubr.msk.f32.mxu1 %vm5000_vm0, %v5001_v4 }
0x1550   :  { %4643 = vmatprep.subr.bf16.mxu1 %v4999_v0 }
0x161d   :  { %v1751_v22 = vpop.f32.mrb[18].mxu1 }
0x161e   :  { %v1752_v43 = vadd.f32 %v1751_v22, %v5467_v53  ;;  %v1753_v55 = vpop.f32.mrb[19].mxu1 }
0x161f   :  { %v1754_v25 = vadd.f32 %v1753_v55, %v5473_v56 }
0x1620   :  { %v1833_v10 = vadd.f32 %v1752_v43, %v5479_v61 }
0x1621   :  { %v1834_v46 = vadd.f32 %v1754_v25, %v5486_v28  ;;  %v5806_v12 = vpop.f32.mrb[20].mxu1 }
0x1622   :  { %v1824_v15 = vpop.f32.mrb[21].mxu1  ;;  %v1835_v49 = vmax.f32 %v1833_v10, 0.0 }
0x1623   :  { %v1836_v26 = vmax.f32 %v1834_v46, 0.0  ;;  %v5812_v17 = vadd.f32 %v1824_v15, %v5483_v3 }
0x1625   :  { %1901 = vmatprep.mubr.f32.mxu0 %v1836_v26  ;;  %v3554_v47 = vmul.f32 -1.442695, %v5812_v17 }
0x1626   :  { %1902 = vmatmul.mubr.f32.vlgmr.msra.gmra.mrb[18].mxu0 %v1835_v49 }
0x1627   :  { %4670 = vmatpush1.bf16.msra.mxu0 %v5265_v33  ;;  %2172 = vmatprep.mubr.f32.mxu0 %v5001_v4  ;;  %4935 = vpow2.f32 %v3554_v47 }
0x1628   :  { %4672 = vmatprep.subr.bf16.mxu0 %v5281_v38 }
0x1631   :  { %v4936_v45 = vpop.eup %4935 }
0x1632   :  { %v1830_v22 = vadd.f32 1.0, %v4936_v45  ;;  %v1823_v45 = vadd.f32 %v5806_v12, %v5615_v62 }
0x1634   :  { %4937 = vrcp.f32 %v1830_v22 }
0x163e   :  { %v4938_v43 = vpop.eup %4937 }
0x16f9   :  { %v3802_v9 = vpop.f32.mrb[18].mxu0 }
0x16fa   :  { %v3803_v29 = vpop.f32.mrb[19].mxu0 }
0x16fb   :  { %v3804_v36 = vadd.f32 %v3803_v29, %v3802_v9 }
0x16fd   :  { %v1907_v54 = vsel %vm638_vm3, %v3804_v36, -inf }
0x16fe   :  { %1908 = vmax.xlane.f32.xlu1 %v1907_v54  ;;  %v2068_v54 = vrot.slane %v5622_v39, 6 }
0x170f   :  { %2064 = vperm.xlu1 %4885, %v4938_v43  }
0x178b   :  { %v1909_v55 = vpop.xlane.xlu1 %1908 }
0x178c   :  { %v1910_v25 = vsub.f32 %v3804_v36, %v1909_v55  ;;  %v2070_v55 = vadd.f32 %v2068_v54, %v1823_v45 }
0x178e   :  { %v1911_v10 = vmul.f32 1.442695, %v1910_v25 }
0x178f   :  { %v2065_v22 = vpop.permute.xlu1 %2064 }
0x1790   :  { %4939 = vpow2.f32 %v1911_v10 }
0x179a   :  { %v4940_v46 = vpop.eup %4939 }
0x179b   :  { %v1913_v15 = vsel %vm638_vm3, %v4940_v46, 0.0 }
0x179c   :  { %1914 = vadd.xlane.f32.xlu0 %v1913_v15 }
0x1829   :  { %v1915_v26 = vpop.xlane.xlu0 %1914 }
0x182a   :  { %4941 = vrcp.f32 %v1915_v26 }
0x1834   :  { %v4942_v49 = vpop.eup %4941 }
0x1835   :  { %v5817_v47 = vmul.f32 %v4942_v49, %v4940_v46 }
0x1837   :  { %4171 = vmatmul.mubr.msk.f32.vlgmr.msra.gmra.mrb[22].mxu1 %vm412_vm2, %v5817_v47 }
0x1838   :  { %4645 = vmatpush3.bf16.msra.mxu1 %v5516_v5  ;;  %4205 = vmatprep.mubr.msk.f32.mxu1 %vm5000_vm0, %v5001_v4 }
0x1839   :  { %4646 = vmatprep.subr.bf16.mxu1 %v4999_v0 }
0x183c   :  { %4648 = vmatpush3.bf16.msra.mxu1 %v5529_v11 }
0x183d   :  { %4649 = vmatprep.subr.bf16.mxu1 %v4999_v0 }
0x1840   :  { %4651 = vmatpush3.bf16.msra.mxu1 %v5541_v50 }
0x1841   :  { %4652 = vmatprep.subr.bf16.mxu1 %v4999_v0 }
0x1844   :  { %4654 = vmatpush3.bf16.msra.mxu1 %v5551_v18 }
0x1845   :  { %4655 = vmatprep.subr.bf16.mxu1 %v4999_v0 }
0x1848   :  { %4657 = vmatpush3.bf16.msra.mxu1 %v5561_v27 }
0x1849   :  { %4658 = vmatprep.subr.bf16.mxu1 %v4999_v0 }
0x184c   :  { %4660 = vmatpush3.bf16.msra.mxu1 %v5571_v32 }
0x184d   :  { %4661 = vmatprep.subr.bf16.mxu1 %v4999_v0 }
0x1850   :  { %4663 = vmatpush3.bf16.msra.mxu1 %v5581_v42 }
0x1851   :  { %4664 = vmatprep.subr.bf16.mxu1 %v4999_v0 }
0x1854   :  { %4666 = vmatpush3.bf16.msra.mxu1 %v5592_v51 }
0x1855   :  { %4676 = vmatprep.subr.bf16.mxu1 %v5314_v52 }
0x190a   :  { %v1987_v9 = vpop.f32.mrb[22].mxu1 }
0x190b   :  { %v1991_v29 = vmul.f32 %v1987_v9, %v5267_v34  ;;  %v4172_v36 = vpop.f32.mrb[23].mxu1 }
0x190d   :  { %4206 = vmatmul.mubr.f32.vlgmr.msra.gmra.mrb[24].mxu1 %v1991_v29 }
0x190e   :  { %4678 = vmatpush3.bf16.msra.mxu1 %v5332_v57 }
0x190f   :  { %4680 = vmatprep.subr.bf16.mxu1 %v5335_v58 }
0x1912   :  { %4682 = vmatpush3.bf16.msra.mxu1 %v5352_v63 }
0x1913   :  { %4684 = vmatprep.subr.bf16.mxu1 %v5355_v1 }
0x1916   :  { %4686 = vmatpush3.bf16.msra.mxu1 %v5370_v7 }
0x1917   :  { %4688 = vmatprep.subr.bf16.mxu1 %v5373_v8 }
0x191a   :  { %4690 = vmatpush3.bf16.msra.mxu1 %v5388_v13 }
0x191b   :  { %4692 = vmatprep.subr.bf16.mxu1 %v5391_v14 }
0x191e   :  { %4694 = vmatpush3.bf16.msra.mxu1 %v5406_v19 }
0x191f   :  { %4696 = vmatprep.subr.bf16.mxu1 %v5409_v20 }
0x1922   :  { %4698 = vmatpush3.bf16.msra.mxu1 %v5418_v23 }
0x1923   :  { %4700 = vmatprep.subr.bf16.mxu1 %v5428_v30 }
0x1926   :  { %4702 = vmatpush3.bf16.msra.mxu1 %v5436_v35 }
0x1927   :  { %4704 = vmatprep.subr.bf16.mxu1 %v5446_v41 }
0x192a   :  { %4706 = vmatpush3.bf16.msra.mxu1 %v5454_v44 }
0x192b   :  { %4735 = vmatprep.subr.bf16.mxu1 %v5246_v24 }
0x19e0   :  { %v2058_v43 = vpop.f32.mrb[24].mxu1 }
0x19e1   :  { %v2067_v25 = vmul.f32 %v2065_v22, %v2058_v43  ;;  %v4207_v10 = vpop.f32.mrb[25].mxu1 }
0x19e3   :  { %v2071_v46 = vadd.f32 %v2070_v55, %v2067_v25 }
0x19e5   :  { %4943 = vtanh.f32 %v2071_v46  ;;  %v3558_v26 = vmul.f32 -1.442695, %v2071_v46 }
0x19e7   :  { %4945 = vpow2.f32 %v3558_v26 }
0x19ef   :  { %v4944_v15 = vpop.eup %4943 }
0x19f0   :  { %2081 = vrot.lane.b32.xlu0 %v4944_v15, %s5004_s10 }
0x19f1   :  { %v4946_v49 = vpop.eup %4945 }
0x19f2   :  { %v2075_v9 = vadd.f32 1.0, %v4946_v49 }
0x19f4   :  { %4947 = vrcp.f32 %v2075_v9 }
0x19fe   :  { %v4948_v29 = vpop.eup %4947 }
0x19ff   :  { %v2079_v39 = vmul.f32 %v4948_v29, %v5785_v21 }
0x1a62   :  { %v2082_v36 = vpop.permute.xlu0 %2081 }
0x1a63   :  { %v2084_v12 = vmul.f32 %v4948_v29, %v2082_v36 }
0x1a65   :  { %2086 = vrot.lane.b32.xlu1 %v2084_v12, %s5005_s2 }
0x1ad7   :  { %v2087_v45 = vpop.permute.xlu1 %2086 }
0x1ad8   :  { %v5862_v54 = vadd.f32 %v2087_v45, %v2079_v39 }
0x1ada   :  { %4949 = vtanh.f32 %v5862_v54 }
0x1ae4   :  { %v4950_v22 = vpop.eup %4949 }
0x1ae5   :  { %2092 = vrot.lane.b32.xlu1 %v4950_v22, %s5006_s0 }
0x1b57   :  { %v2093_v43 = vpop.permute.xlu1 %2092 }
0x1b58   :  { %v2095_v55 = vmul.f32 %v4948_v29, %v2093_v43 }
0x1b5a   :  { %v2103_v25 = vrot.slane %v2095_v55, %v5633_v2 }
0x1b5c   :  { %2104 = vrot.lane.b32.xlu1 %v2103_v25, %s5008_s11 }
0x1bce   :  { %v2105_v10 = vpop.permute.xlu1 %2104 }
0x1bcf   :  { %3559 = vmatmul.mubr.msk.f32.vlgmr.msra.gmra.mrb[20].mxu0 %vm412_vm2, %v2105_v10 }
0x1bd0   :  { %4674 = vmatpush1.bf16.msra.mxu0 %v5308_v48  ;;  %2243 = vmatprep.mubr.f32.mxu0 %v5001_v4 }
0x1bd1   :  { %4707 = vmatprep.subr.bf16.mxu0 %v4999_v0 }
0x1bd3   :  { %3560 = vmatmul.mubr.msk.f32.vlgmr.msra.gmra.mrb[22].mxu0 %vm412_vm2, %v2105_v10 }
0x1bd4   :  { %4709 = vmatpush3.bf16.msk.msra.mxu0 %vm5502_vm10, %v6114_v60  ;;  %4212 = vmatprep.mubr.msk.f32.mxu0 %vm5000_vm0, %v5001_v4 }
0x1bd5   :  { %4710 = vmatprep.subr.bf16.mxu0 %v4999_v0 }
0x1ca2   :  { %v2174_v21 = vpop.f32.mrb[20].mxu0 }
0x1ca3   :  { %v2175_v46 = vadd.f32 %v2174_v21, %v5467_v53  ;;  %v2176_v15 = vpop.f32.mrb[21].mxu0 }
0x1ca4   :  { %v2177_v26 = vadd.f32 %v2176_v15, %v5473_v56 }
0x1ca5   :  { %v2256_v49 = vadd.f32 %v2175_v46, %v5479_v61 }
0x1ca6   :  { %v2257_v9 = vadd.f32 %v2177_v26, %v5486_v28  ;;  %v5883_v29 = vpop.f32.mrb[22].mxu0 }
0x1ca7   :  { %v2247_v36 = vpop.f32.mrb[23].mxu0  ;;  %v2258_v39 = vmax.f32 %v2256_v49, 0.0 }
0x1ca8   :  { %v2259_v12 = vmax.f32 %v2257_v9, 0.0  ;;  %v5889_v45 = vadd.f32 %v2247_v36, %v5483_v3 }
0x1caa   :  { %2324 = vmatprep.mubr.f32.mxu1 %v2259_v12  ;;  %v3561_v22 = vmul.f32 -1.442695, %v5889_v45 }
0x1cab   :  { %2325 = vmatmul.mubr.f32.vlgmr.msra.gmra.mrb[26].mxu1 %v2258_v39 }
0x1cac   :  { %4737 = vmatpush1.bf16.msra.mxu1 %v5265_v33  ;;  %2593 = vmatprep.mubr.f32.mxu1 %v5001_v4  ;;  %4951 = vpow2.f32 %v3561_v22 }
0x1cad   :  { %4739 = vmatprep.subr.bf16.mxu1 %v5281_v38 }
0x1cb6   :  { %v4952_v21 = vpop.eup %4951 }
0x1cb7   :  { %v2253_v46 = vadd.f32 1.0, %v4952_v21  ;;  %v2246_v21 = vadd.f32 %v5883_v29, %v5615_v62 }
0x1cb9   :  { %4953 = vrcp.f32 %v2253_v46  ;;  %v5938_v46 = vld [vmem:[%s6112_s1 + $0x8] sm:$0x3f]  ;;  %s5009_s1 = smov 64  }
0x1cc3   :  { %v4954_v15 = vpop.eup %4953 }
0x1d7e   :  { %v3857_v43 = vpop.f32.mrb[26].mxu1 }
0x1d7f   :  { %v3858_v55 = vpop.f32.mrb[27].mxu1 }
0x1d80   :  { %v3859_v25 = vadd.f32 %v3858_v55, %v3857_v43 }
0x1d82   :  { %v2330_v10 = vsel %vm638_vm3, %v3859_v25, -inf }
0x1d83   :  { %2331 = vmax.xlane.f32.xlu0 %v2330_v10 }
0x1d99   :  { %2487 = vperm.xlu0 %4886, %v4954_v15  }
0x1e10   :  { %v2332_v26 = vpop.xlane.xlu0 %2331 }
0x1e11   :  { %v2333_v49 = vsub.f32 %v3859_v25, %v2332_v26 }
0x1e13   :  { %v2334_v9 = vmul.f32 1.442695, %v2333_v49  ;;  %v2491_v49 = vadd.f32 %v2246_v21, %v5938_v46 }
0x1e15   :  { %4955 = vpow2.f32 %v2334_v9 }
0x1e18   :  { %v2488_v15 = vpop.permute.xlu0 %2487 }
0x1e1f   :  { %v4956_v36 = vpop.eup %4955 }
0x1e20   :  { %v2336_v12 = vsel %vm638_vm3, %v4956_v36, 0.0 }
0x1e21   :  { %2337 = vadd.xlane.f32.xlu1 %v2336_v12 }
0x1eae   :  { %v2338_v39 = vpop.xlane.xlu1 %2337 }
0x1eaf   :  { %4957 = vrcp.f32 %v2338_v39 }
0x1eb9   :  { %v4958_v22 = vpop.eup %4957 }
0x1eba   :  { %v5894_v43 = vmul.f32 %v4958_v22, %v4956_v36 }
0x1ebc   :  { %4213 = vmatmul.mubr.msk.f32.vlgmr.msra.gmra.mrb[24].mxu0 %vm412_vm2, %v5894_v43 }
0x1ebd   :  { %4712 = vmatpush3.bf16.msra.mxu0 %v5516_v5  ;;  %4247 = vmatprep.mubr.msk.f32.mxu0 %vm5000_vm0, %v5001_v4 }
0x1ebe   :  { %4713 = vmatprep.subr.bf16.mxu0 %v4999_v0 }
0x1ec1   :  { %4715 = vmatpush3.bf16.msra.mxu0 %v5529_v11 }
0x1ec2   :  { %4716 = vmatprep.subr.bf16.mxu0 %v4999_v0 }
0x1ec5   :  { %4718 = vmatpush3.bf16.msra.mxu0 %v5541_v50 }
0x1ec6   :  { %4719 = vmatprep.subr.bf16.mxu0 %v4999_v0 }
0x1ec9   :  { %4721 = vmatpush3.bf16.msra.mxu0 %v5551_v18 }
0x1eca   :  { %4722 = vmatprep.subr.bf16.mxu0 %v4999_v0 }
0x1ecd   :  { %4724 = vmatpush3.bf16.msra.mxu0 %v5561_v27 }
0x1ece   :  { %4725 = vmatprep.subr.bf16.mxu0 %v4999_v0 }
0x1ed1   :  { %4727 = vmatpush3.bf16.msra.mxu0 %v5571_v32 }
0x1ed2   :  { %4728 = vmatprep.subr.bf16.mxu0 %v4999_v0 }
0x1ed5   :  { %4730 = vmatpush3.bf16.msra.mxu0 %v5581_v42 }
0x1ed6   :  { %4731 = vmatprep.subr.bf16.mxu0 %v4999_v0 }
0x1ed9   :  { %4733 = vmatpush3.bf16.msra.mxu0 %v5592_v51 }
0x1eda   :  { %4743 = vmatprep.subr.bf16.mxu0 %v5314_v52 }
0x1f8f   :  { %v2410_v55 = vpop.f32.mrb[24].mxu0 }
0x1f90   :  { %v2414_v25 = vmul.f32 %v2410_v55, %v5267_v34  ;;  %v4214_v10 = vpop.f32.mrb[25].mxu0 }
0x1f92   :  { %4248 = vmatmul.mubr.f32.vlgmr.msra.gmra.mrb[26].mxu0 %v2414_v25 }
0x1f93   :  { %4745 = vmatpush3.bf16.msra.mxu0 %v5332_v57 }
0x1f94   :  { %4747 = vmatprep.subr.bf16.mxu0 %v5335_v58 }
0x1f97   :  { %4749 = vmatpush3.bf16.msra.mxu0 %v5352_v63 }
0x1f98   :  { %4751 = vmatprep.subr.bf16.mxu0 %v5355_v1 }
0x1f9b   :  { %4753 = vmatpush3.bf16.msra.mxu0 %v5370_v7 }
0x1f9c   :  { %4755 = vmatprep.subr.bf16.mxu0 %v5373_v8 }
0x1f9f   :  { %4757 = vmatpush3.bf16.msra.mxu0 %v5388_v13 }
0x1fa0   :  { %4759 = vmatprep.subr.bf16.mxu0 %v5391_v14 }
0x1fa3   :  { %4761 = vmatpush3.bf16.msra.mxu0 %v5406_v19 }
0x1fa4   :  { %4763 = vmatprep.subr.bf16.mxu0 %v5409_v20 }
0x1fa7   :  { %4765 = vmatpush3.bf16.msra.mxu0 %v5418_v23 }
0x1fa8   :  { %4767 = vmatprep.subr.bf16.mxu0 %v5428_v30 }
0x1fab   :  { %4769 = vmatpush3.bf16.msra.mxu0 %v5436_v35 }
0x1fac   :  { %4771 = vmatprep.subr.bf16.mxu0 %v5446_v41 }
0x1faf   :  { %4773 = vmatpush3.bf16.msra.mxu0 %v5454_v44 }
0x1fb0   :  { %4802 = vmatprep.subr.bf16.mxu0 %v5246_v24 }
0x2065   :  { %v2481_v26 = vpop.f32.mrb[26].mxu0 }
0x2066   :  { %v2490_v9 = vmul.f32 %v2488_v15, %v2481_v26  ;;  %v4249_v36 = vpop.f32.mrb[27].mxu0 }
0x2068   :  { %v2492_v12 = vadd.f32 %v2491_v49, %v2490_v9 }
0x206a   :  { %4959 = vtanh.f32 %v2492_v12  ;;  %v3565_v24 = vmul.f32 -1.442695, %v2492_v12 }
0x206c   :  { %4961 = vpow2.f32 %v3565_v24 }
0x2074   :  { %v4960_v39 = vpop.eup %4959 }
0x2075   :  { %2502 = vrot.lane.b32.xlu1 %v4960_v39, %s5004_s10 }
0x2076   :  { %v4962_v22 = vpop.eup %4961 }
0x2077   :  { %v2496_v29 = vadd.f32 1.0, %v4962_v22 }
0x2079   :  { %4963 = vrcp.f32 %v2496_v29 }
0x2083   :  { %v4964_v55 = vpop.eup %4963 }
0x2084   :  { %v2500_v60 = vmul.f32 %v4964_v55, %v5862_v54 }
0x20e7   :  { %v2503_v25 = vpop.permute.xlu1 %2502 }
0x20e8   :  { %v2505_v10 = vmul.f32 %v4964_v55, %v2503_v25 }
0x20ea   :  { %2507 = vrot.lane.b32.xlu0 %v2505_v10, %s5005_s2 }
0x215c   :  { %v2508_v21 = vpop.permute.xlu0 %2507 }
0x215d   :  { %v5944_v15 = vadd.f32 %v2508_v21, %v2500_v60  ;;  %v6118_v60 = vmov 1.0|1.0  }
0x215f   :  { %4965 = vtanh.f32 %v5944_v15 }
0x2169   :  { %v4966_v26 = vpop.eup %4965 }
0x216a   :  { %2513 = vrot.lane.b32.xlu1 %v4966_v26, %s5006_s0 }
0x21dc   :  { %v2514_v49 = vpop.permute.xlu1 %2513 }
0x21dd   :  { %v2516_v9 = vmul.f32 %v4964_v55, %v2514_v49 }
0x21df   :  { %v2524_v36 = vrot.slane %v2516_v9, %v5633_v2 }
0x21e1   :  { %2525 = vrot.lane.b32.xlu0 %v2524_v36, %s5008_s11 }
0x2253   :  { %v2526_v12 = vpop.permute.xlu0 %2525 }
0x2254   :  { %3566 = vmatmul.mubr.msk.f32.vlgmr.msra.gmra.mrb[28].mxu1 %vm412_vm2, %v2526_v12 }
0x2255   :  { %4741 = vmatpush1.bf16.msra.mxu1 %v5308_v48  ;;  %2664 = vmatprep.mubr.f32.mxu1 %v5001_v4 }
0x2256   :  { %4774 = vmatprep.subr.bf16.mxu1 %v4999_v0 }
0x2258   :  { %3567 = vmatmul.mubr.msk.f32.vlgmr.msra.gmra.mrb[30].mxu1 %vm412_vm2, %v2526_v12 }
0x2259   :  { %4776 = vmatpush3.bf16.msk.msra.mxu1 %vm5502_vm10, %v6118_v60  ;;  %4254 = vmatprep.mubr.msk.f32.mxu1 %vm5000_vm0, %v5001_v4 }
0x225a   :  { %4777 = vmatprep.subr.bf16.mxu1 %v4999_v0 }
0x2327   :  { %v2595_v54 = vpop.f32.mrb[28].mxu1 }
0x2328   :  { %v2596_v39 = vadd.f32 %v2595_v54, %v5467_v53  ;;  %v2597_v24 = vpop.f32.mrb[29].mxu1 }
0x2329   :  { %v2598_v22 = vadd.f32 %v2597_v24, %v5473_v56 }
0x232a   :  { %v2677_v29 = vadd.f32 %v2596_v39, %v5479_v61 }
0x232b   :  { %v2678_v55 = vadd.f32 %v2598_v22, %v5486_v28  ;;  %v5965_v25 = vpop.f32.mrb[30].mxu1 }
0x232c   :  { %v2668_v10 = vpop.f32.mrb[31].mxu1  ;;  %v2679_v26 = vmax.f32 %v2677_v29, 0.0 }
0x232d   :  { %v2680_v21 = vmax.f32 %v2678_v55, 0.0  ;;  %v5972_v24 = vadd.f32 %v2668_v10, %v5483_v3 }
0x232f   :  { %2745 = vmatprep.mubr.f32.mxu0 %v2680_v21  ;;  %v3568_v29 = vmul.f32 -1.442695, %v5972_v24 }
0x2330   :  { %2746 = vmatmul.mubr.f32.vlgmr.msra.gmra.mrb[28].mxu0 %v2679_v26 }
0x2331   :  { %4804 = vmatpush1.bf16.msra.mxu0 %v5265_v33  ;;  %3017 = vmatprep.mubr.f32.mxu0 %v5001_v4 }
0x2332   :  { %4806 = vmatprep.subr.bf16.mxu0 %v5281_v38 }
0x2403   :  { %v3912_v49 = vpop.f32.mrb[28].mxu0 }
0x2404   :  { %v3913_v9 = vpop.f32.mrb[29].mxu0 }
0x2405   :  { %v3914_v36 = vadd.f32 %v3913_v9, %v3912_v49 }
0x2407   :  { %v2751_v12 = vsel %vm638_vm3, %v3914_v36, -inf }
0x2408   :  { %2752 = vmax.xlane.f32.xlu1 %v2751_v12 }
0x2495   :  { %v2753_v54 = vpop.xlane.xlu1 %2752 }
0x2496   :  { %v2754_v39 = vsub.f32 %v3914_v36, %v2753_v54 }
0x2498   :  { %v2755_v22 = vmul.f32 1.442695, %v2754_v39 }
0x249a   :  { %4967 = vpow2.f32 %v2755_v22 }
0x249b   :  { %4969 = vpow2.f32 %v3568_v29 }
0x24a4   :  { %v4968_v33 = vpop.eup %4967 }
0x24a5   :  { %v2757_v55 = vsel %vm638_vm3, %v4968_v33, 0.0  ;;  %v4970_v21 = vpop.eup %4969 }
0x24a6   :  { %2758 = vadd.xlane.f32.xlu0 %v2757_v55  ;;  %v2674_v26 = vadd.f32 1.0, %v4970_v21 }
0x24a8   :  { %4971 = vrcp.f32 %v2674_v26 }
0x24b2   :  { %v4972_v49 = vpop.eup %4971 }
0x24bc   :  { %2908 = vperm.xlu0 %4886, %v4972_v49  }
0x2533   :  { %v2759_v9 = vpop.xlane.xlu0 %2758 }
0x2534   :  { %4973 = vrcp.f32 %v2759_v9 }
0x253e   :  { %v4974_v36 = vpop.eup %4973 }
0x253f   :  { %v5976_v12 = vmul.f32 %v4974_v36, %v4968_v33 }
0x2541   :  { %4255 = vmatmul.mubr.msk.f32.vlgmr.msra.gmra.mrb[32].mxu1 %vm412_vm2, %v5976_v12 }
0x2542   :  { %4779 = vmatpush3.bf16.msra.mxu1 %v5516_v5  ;;  %4289 = vmatprep.mubr.msk.f32.mxu1 %vm5000_vm0, %v5001_v4 }
0x2543   :  { %4780 = vmatprep.subr.bf16.mxu1 %v4999_v0 }
0x2546   :  { %4782 = vmatpush3.bf16.msra.mxu1 %v5529_v11 }
0x2547   :  { %4783 = vmatprep.subr.bf16.mxu1 %v4999_v0 }
0x254a   :  { %4785 = vmatpush3.bf16.msra.mxu1 %v5541_v50 }
0x254b   :  { %4786 = vmatprep.subr.bf16.mxu1 %v4999_v0 }
0x254e   :  { %4788 = vmatpush3.bf16.msra.mxu1 %v5551_v18 }
0x254f   :  { %4789 = vmatprep.subr.bf16.mxu1 %v4999_v0 }
0x2552   :  { %4791 = vmatpush3.bf16.msra.mxu1 %v5561_v27 }
0x2553   :  { %4792 = vmatprep.subr.bf16.mxu1 %v4999_v0 }
0x2556   :  { %4794 = vmatpush3.bf16.msra.mxu1 %v5571_v32 }
0x2557   :  { %4795 = vmatprep.subr.bf16.mxu1 %v4999_v0 }
0x255a   :  { %4797 = vmatpush3.bf16.msra.mxu1 %v5581_v42 }
0x255b   :  { %4798 = vmatprep.subr.bf16.mxu1 %v4999_v0 }
0x255e   :  { %4800 = vmatpush3.bf16.msra.mxu1 %v5592_v51 }
0x255f   :  { %4810 = vmatprep.subr.bf16.mxu1 %v5314_v52  ;;  %v2667_v52 = vadd.f32 %v5965_v25, %v5615_v62 }
0x2614   :  { %v2831_v10 = vpop.f32.mrb[32].mxu1 }
0x2615   :  { %v2835_v54 = vmul.f32 %v2831_v10, %v5267_v34  ;;  %v4256_v39 = vpop.f32.mrb[33].mxu1 }
0x2617   :  { %4290 = vmatmul.mubr.f32.vlgmr.msra.gmra.mrb[34].mxu1 %v2835_v54 }
0x2618   :  { %4812 = vmatpush3.bf16.msra.mxu1 %v5332_v57  ;;  %v2913_v57 = vrot.slane %v5938_v46, 2 }
0x2619   :  { %4814 = vmatprep.subr.bf16.mxu1 %v5335_v58  ;;  %v2909_v58 = vpop.permute.xlu0 %2908 }
0x261c   :  { %4816 = vmatpush3.bf16.msra.mxu1 %v5352_v63 }
0x261d   :  { %4818 = vmatprep.subr.bf16.mxu1 %v5355_v1  ;;  %v2915_v1 = vadd.f32 %v2913_v57, %v2667_v52 }
0x2620   :  { %4820 = vmatpush3.bf16.msra.mxu1 %v5370_v7 }
0x2621   :  { %4822 = vmatprep.subr.bf16.mxu1 %v5373_v8 }
0x2624   :  { %4824 = vmatpush3.bf16.msra.mxu1 %v5388_v13 }
0x2625   :  { %4826 = vmatprep.subr.bf16.mxu1 %v5391_v14 }
0x2628   :  { %4828 = vmatpush3.bf16.msra.mxu1 %v5406_v19 }
0x2629   :  { %4830 = vmatprep.subr.bf16.mxu1 %v5409_v20 }
0x262c   :  { %4832 = vmatpush3.bf16.msra.mxu1 %v5418_v23 }
0x262d   :  { %4834 = vmatprep.subr.bf16.mxu1 %v5428_v30 }
0x2630   :  { %4836 = vmatpush3.bf16.msra.mxu1 %v5436_v35 }
0x2631   :  { %4838 = vmatprep.subr.bf16.mxu1 %v5446_v41 }
0x2634   :  { %4840 = vmatpush3.bf16.msra.mxu1 %v5454_v44 }
0x2635   :  { %4869 = vmatprep.subr.bf16.mxu1 %v5281_v38 }
0x26ea   :  { %v2902_v63 = vpop.f32.mrb[34].mxu1 }
0x26eb   :  { %v2911_v7 = vmul.f32 %v2909_v58, %v2902_v63  ;;  %v4291_v8 = vpop.f32.mrb[35].mxu1 }
0x26ed   :  { %v2916_v13 = vadd.f32 %v2915_v1, %v2911_v7 }
0x26ef   :  { %4975 = vtanh.f32 %v2916_v13  ;;  %v3572_v19 = vmul.f32 -1.442695, %v2916_v13 }
0x26f1   :  { %4977 = vpow2.f32 %v3572_v19 }
0x26f9   :  { %v4976_v14 = vpop.eup %4975 }
0x26fa   :  { %2926 = vrot.lane.b32.xlu1 %v4976_v14, %s5004_s10 }
0x26fb   :  { %v4978_v20 = vpop.eup %4977 }
0x26fc   :  { %v2920_v23 = vadd.f32 1.0, %v4978_v20 }
0x26fe   :  { %4979 = vrcp.f32 %v2920_v23 }
0x2708   :  { %v4980_v38 = vpop.eup %4979 }
0x2709   :  { %v2924_v41 = vmul.f32 %v4980_v38, %v5944_v15 }
0x276c   :  { %v2927_v30 = vpop.permute.xlu1 %2926 }
0x276d   :  { %v2929_v35 = vmul.f32 %v4980_v38, %v2927_v30 }
0x276f   :  { %2931 = vrot.lane.b32.xlu1 %v2929_v35, %s5005_s2 }
0x27e1   :  { %v2932_v44 = vpop.permute.xlu1 %2931 }
0x27e2   :  { %v6021_v25 = vadd.f32 %v2932_v44, %v2924_v41 }
0x27e4   :  { %4981 = vtanh.f32 %v6021_v25 }
0x27ee   :  { %v4982_v22 = vpop.eup %4981 }
0x27ef   :  { %2937 = vrot.lane.b32.xlu0 %v4982_v22, %s5006_s0 }
0x2861   :  { %v2938_v29 = vpop.permute.xlu0 %2937 }
0x2862   :  { %v2940_v33 = vmul.f32 %v4980_v38, %v2938_v29 }
0x2864   :  { %v2948_v55 = vrot.slane %v2940_v33, %v5633_v2 }
0x2866   :  { %2949 = vrot.lane.b32.xlu1 %v2948_v55, %s5008_s11 }
0x28d8   :  { %v2950_v21 = vpop.permute.xlu1 %2949 }
0x28d9   :  { %3573 = vmatmul.mubr.msk.f32.vlgmr.msra.gmra.mrb[30].mxu0 %vm412_vm2, %v2950_v21 }
0x28da   :  { %4808 = vmatpush1.bf16.msra.mxu0 %v5308_v48  ;;  %3088 = vmatprep.mubr.f32.mxu0 %v5001_v4 }
0x28db   :  { %4841 = vmatprep.subr.bf16.mxu0 %v4999_v0 }
0x28dd   :  { %3574 = vmatmul.mubr.msk.f32.vlgmr.msra.gmra.mrb[32].mxu0 %vm412_vm2, %v2950_v21 }
0x28de   :  { %4843 = vmatpush3.bf16.msk.msra.mxu0 %vm5502_vm10, %v6118_v60  ;;  %4296 = vmatprep.mubr.msk.f32.mxu0 %vm5000_vm0, %v5001_v4 }
0x28df   :  { %4844 = vmatprep.subr.bf16.mxu0 %v4999_v0 }
0x29ac   :  { %v3019_v15 = vpop.f32.mrb[30].mxu0 }
0x29ad   :  { %v3020_v26 = vadd.f32 %v3019_v15, %v5467_v53  ;;  %v3021_v49 = vpop.f32.mrb[31].mxu0 }
0x29ae   :  { %v3022_v9 = vadd.f32 %v3021_v49, %v5473_v56 }
0x29af   :  { %v3101_v36 = vadd.f32 %v3020_v26, %v5479_v61 }
0x29b0   :  { %v3102_v10 = vadd.f32 %v3022_v9, %v5486_v28  ;;  %v3090_v54 = vpop.f32.mrb[32].mxu0 }
0x29b1   :  { %v3092_v39 = vpop.f32.mrb[33].mxu0  ;;  %v3103_v59 = vmax.f32 %v3101_v36, 0.0 }
0x29b2   :  { %v3104_v52 = vmax.f32 %v3102_v10, 0.0  ;;  %v6045_v60 = vadd.f32 %v3092_v39, %v5483_v3 }
0x29b4   :  { %3169 = vmatprep.mubr.f32.mxu1 %v3104_v52  ;;  %v3575_v53 = vmul.f32 -1.442695, %v6045_v60 }
0x29b5   :  { %3170 = vmatmul.mubr.f32.vlgmr.msra.gmra.mrb[36].mxu1 %v3103_v59 }
0x29b6   :  { %4871 = vmatpush1.bf16.msra.mxu1 %v5308_v48  ;;  %3440 = vmatprep.mubr.f32.mxu1 %v5001_v4  ;;  %4983 = vpow2.f32 %v3575_v53 }
0x29c0   :  { %v4984_v58 = vpop.eup %4983 }
0x29c1   :  { %v3098_v63 = vadd.f32 1.0, %v4984_v58 }
0x29c3   :  { %4985 = vrcp.f32 %v3098_v63 }
0x29cd   :  { %v4986_v1 = vpop.eup %4985 }
0x2a88   :  { %v3967_v56 = vpop.f32.mrb[36].mxu1 }
0x2a89   :  { %v3968_v61 = vpop.f32.mrb[37].mxu1 }
0x2a8a   :  { %v3969_v57 = vadd.f32 %v3968_v61, %v3967_v56 }
0x2a8c   :  { %v3175_v28 = vsel %vm638_vm3, %v3969_v57, -inf }
0x2a8d   :  { %3176 = vmax.xlane.f32.xlu0 %v3175_v28 }
0x2aa3   :  { %3332 = vperm.xlu0 %4886, %v4986_v1  }
0x2b1a   :  { %v3177_v48 = vpop.xlane.xlu0 %3176 }
0x2b1b   :  { %v3178_v7 = vsub.f32 %v3969_v57, %v3177_v48 }
0x2b1d   :  { %v3179_v8 = vmul.f32 1.442695, %v3178_v7 }
0x2b1f   :  { %4987 = vpow2.f32 %v3179_v8 }
0x2b22   :  { %v3333_v38 = vpop.permute.xlu0 %3332 }
0x2b29   :  { %v4988_v13 = vpop.eup %4987 }
0x2b2a   :  { %v3181_v14 = vsel %vm638_vm3, %v4988_v13, 0.0 }
0x2b2b   :  { %3182 = vadd.xlane.f32.xlu1 %v3181_v14 }
0x2bb8   :  { %v3183_v19 = vpop.xlane.xlu1 %3182 }
0x2bb9   :  { %4989 = vrcp.f32 %v3183_v19 }
0x2bc3   :  { %v4990_v20 = vpop.eup %4989 }
0x2bc4   :  { %v3185_v23 = vmul.f32 %v4990_v20, %v4988_v13 }
0x2bc6   :  { %4297 = vmatmul.mubr.msk.f32.vlgmr.msra.gmra.mrb[34].mxu0 %vm412_vm2, %v3185_v23 }
0x2bc7   :  { %4846 = vmatpush3.bf16.msra.mxu0 %v5516_v5  ;;  %4331 = vmatprep.mubr.msk.f32.mxu0 %vm5000_vm0, %v5001_v4 }
0x2bc8   :  { %4847 = vmatprep.subr.bf16.mxu0 %v4999_v0 }
0x2bcb   :  { %4849 = vmatpush3.bf16.msra.mxu0 %v5529_v11 }
0x2bcc   :  { %4850 = vmatprep.subr.bf16.mxu0 %v4999_v0 }
0x2bcf   :  { %4852 = vmatpush3.bf16.msra.mxu0 %v5541_v50 }
0x2bd0   :  { %4853 = vmatprep.subr.bf16.mxu0 %v4999_v0 }
0x2bd3   :  { %4855 = vmatpush3.bf16.msra.mxu0 %v5551_v18  ;;  %v3091_v18 = vadd.f32 %v3090_v54, %v5615_v62 }
0x2bd4   :  { %4856 = vmatprep.subr.bf16.mxu0 %v4999_v0 }
0x2bd7   :  { %4858 = vmatpush3.bf16.msra.mxu0 %v5561_v27  ;;  %v3336_v27 = vrot.slane %v5938_v46, 4 }
0x2bd8   :  { %4859 = vmatprep.subr.bf16.mxu0 %v4999_v0 }
0x2bdb   :  { %4861 = vmatpush3.bf16.msra.mxu0 %v5571_v32  ;;  %v3338_v32 = vadd.f32 %v3336_v27, %v3091_v18 }
0x2bdc   :  { %4862 = vmatprep.subr.bf16.mxu0 %v4999_v0 }
0x2bdf   :  { %4864 = vmatpush3.bf16.msra.mxu0 %v5581_v42 }
0x2be0   :  { %4865 = vmatprep.subr.bf16.mxu0 %v4999_v0 }
0x2be3   :  { %4867 = vmatpush3.bf16.msra.mxu0 %v5592_v51 }
0x2c99   :  { %v3255_v5 = vpop.f32.mrb[34].mxu0 }
0x2c9a   :  { %v3259_v11 = vmul.f32 %v3255_v5, %v5267_v34  ;;  %v4298_v50 = vpop.f32.mrb[35].mxu0 }
0x2c9c   :  { %4332 = vmatmul.mubr.f32.vlgmr.msra.gmra.mrb[36].mxu0 %v3259_v11 }
0x2d6f   :  { %v3326_v30 = vpop.f32.mrb[36].mxu0 }
0x2d70   :  { %v3335_v35 = vmul.f32 %v3333_v38, %v3326_v30  ;;  %v4333_v41 = vpop.f32.mrb[37].mxu0 }
0x2d72   :  { %v3339_v44 = vadd.f32 %v3338_v32, %v3335_v35 }
0x2d74   :  { %4991 = vtanh.f32 %v3339_v44  ;;  %v3579_v0 = vmul.f32 -1.442695, %v3339_v44 }
0x2d76   :  { %4993 = vpow2.f32 %v3579_v0 }
0x2d7e   :  { %v4992_v42 = vpop.eup %4991 }
0x2d7f   :  { %3349 = vrot.lane.b32.xlu1 %v4992_v42, %s5004_s10 }
0x2d80   :  { %v4994_v51 = vpop.eup %4993 }
0x2d81   :  { %v3343_v34 = vadd.f32 1.0, %v4994_v51 }
0x2d83   :  { %4995 = vrcp.f32 %v3343_v34 }
0x2d8d   :  { %v4996_v22 = vpop.eup %4995 }
0x2d8e   :  { %v3347_v46 = vmul.f32 %v4996_v22, %v6021_v25 }
0x2df1   :  { %v3350_v29 = vpop.permute.xlu1 %3349 }
0x2df2   :  { %v3352_v62 = vmul.f32 %v4996_v22, %v3350_v29 }
0x2df4   :  { %3354 = vrot.lane.b32.xlu0 %v3352_v62, %s5005_s2 }
0x2e66   :  { %v3355_v33 = vpop.permute.xlu0 %3354 }
0x2e67   :  { %v3357_v55 = vadd.f32 %v3355_v33, %v3347_v46 }
0x2e69   :  { %4997 = vtanh.f32 %v3357_v55 }
0x2e73   :  { %v4998_v21 = vpop.eup %4997 }
0x2e74   :  { %3360 = vrot.lane.b32.xlu1 %v4998_v21, %s5006_s0 }
0x2e78   :  { %3472 = vrot.lane.b32.xlu1 %v5817_v47, %s5005_s2 }
0x2e7c   :  { %3475 = vrot.lane.b32.xlu1 %v5894_v43, %s5006_s0 }
0x2e80   :  { %3451 = vrot.lane.b32.xlu1 %v5812_v17, %s5009_s1 }
0x2e84   :  { %3481 = vrot.lane.b32.xlu1 %v3185_v23, %s5009_s1 }
0x2ee6   :  { %v3361_v15 = vpop.permute.xlu1 %3360 }
0x2ee7   :  { %v3363_v26 = vmul.f32 %v4996_v22, %v3361_v15 }
0x2ee9   :  { %v3371_v25 = vrot.slane %v3363_v26, %v5633_v2 }
0x2eeb   :  { %3372 = vrot.lane.b32.xlu0 %v3371_v25, %s5008_s11 }
0x2eef   :  { %3459 = vrot.lane.b32.xlu0 %v6045_v60, %s5006_s0 }
0x2ef3   :  { %3447 = vrot.lane.b32.xlu0 %v5736_v37, %s5006_s0  ;;  %v3473_v37 = vpop.permute.xlu1 %3472 }
0x2ef7   :  { %3478 = vrot.lane.b32.xlu0 %v5976_v12, %s5010_s14  ;;  %v3476_v12 = vpop.permute.xlu1 %3475 }
0x2efb   :  { %3466 = vrot.lane.b32.xlu0 %v5518_v6, %s5004_s10  ;;  %v3452_v10 = vpop.permute.xlu1 %3451 }
0x2eff   :  { %3455 = vrot.lane.b32.xlu0 %v5889_v45, %s5004_s10  ;;  %v3495_v45 = vsel %vm412_vm2, %v5740_v16, %v3473_v37  ;;  %v3482_v52 = vpop.permute.xlu1 %3481 }
0x2f00   :  { %v3496_v54 = vsel %vm3484_vm11, %v3495_v45, %v3476_v12 }
0x2f5d   :  { %v3373_v17 = vpop.permute.xlu0 %3372 }
0x2f5e   :  { %3580 = vmatmul.mubr.msk.f32.vlgmr.msra.gmra.mrb[38].mxu1 %vm412_vm2, %v3373_v17 }
0x2f61   :  { %v3460_v9 = vpop.permute.xlu0 %3459 }
0x2f65   :  { %v3448_v36 = vpop.permute.xlu0 %3447 }
0x2f66   :  { %v3485_v53 = vsel %vm3484_vm11, %v5658_v31, %v3448_v36 }
0x2f67   :  { %v3487_v28 = vsel %vm3486_vm12, %v3485_v53, %v3452_v10 }
0x2f69   :  { %v3479_v6 = vpop.permute.xlu0 %3478 }
0x2f6a   :  { %v3497_v39 = vsel %vm121_vm1, %v3496_v54, %v3479_v6 }
0x2f6d   :  { %v3467_v59 = vpop.permute.xlu0 %3466 }
0x2f71   :  { %v3456_v57 = vpop.permute.xlu0 %3455 }
0x2f72   :  { %v3489_v1 = vsel %vm3488_vm14, %v3487_v28, %v3456_v57 }
0x3031   :  { %v3442_v47 = vpop.f32.mrb[38].mxu1 }
0x3032   :  { %v3443_v43 = vpop.f32.mrb[39].mxu1 }
0x3033   :  { %v3444_v49 = vadd.f32 %v3443_v43, %v5483_v3  ;;  %v3498_v3 = vsel %vm3486_vm12, %v3497_v39, %v3482_v52 }
0x3034   :  { %v3500_v56 = vsel %vm3499_vm13, %v3498_v3, 0.0 }
0x3035   :  { %3463 = vrot.lane.b32.xlu1 %v3444_v49, %s5009_s1  ;;  %v3506_v16 = vcombine.low %v3500_v56, %v5001_v4 }
0x3037   :  { %v3520_v8 = vrot.slane %v3506_v16, %v5633_v2 }
0x3039   :  { %3469 = vrot.lane.b32.xlu1 %v5663_v40, %s5011_s15  ;;  %v3490_v40 = vsel %vm3484_vm11, %v5972_v24, %v3460_v9 }
0x30a7   :  { %v3464_v60 = vpop.permute.xlu1 %3463 }
0x30a8   :  { %v3491_v61 = vsel %vm3486_vm12, %v3490_v40, %v3464_v60 }
0x30a9   :  { %v3492_v58 = vsel %vm3488_vm14, %v3491_v61, %v3467_v59 }
0x30ab   :  { %v3470_v63 = vpop.permute.xlu1 %3469 }
0x30ac   :  { %v3494_v48 = vsel %vm3493_vm15, %v3492_v58, %v3470_v63 }
0x30ad   :  { %v3505_v7 = vcombine.low %v3489_v1, %v3494_v48 }
0x30af   :  { %v3513_v24 = vrot.slane %v3505_v7, %v5633_v2 }
0x30b1   :  { %v3521_v13 = vcombine.low %v3513_v24, %v3520_v8 }
0x30b3   :  { %3523 = vst [vmem:[%s6113_s8] sm:$0xff] %v3521_v13 }

</bundles_post_ra>
